<compile_context>
chip_gen: v7x
topology: tpu7x:2x2x1
jax: 0.10.0
libtpu: 0.0.40
codegen_flags: <defaults>
</compile_context>

<pallas_src>
import functools
import math

import jax
import jax.numpy as jnp
from jax.experimental import pallas as pl
from jax.experimental.pallas import tpu as pltpu

_LANE = 128      # vreg lane width (last dim)
_SUBLANE = 8     # vreg sublane count (second-to-last dim)


def _round_up(x, m):
    return ((x + m - 1) // m) * m


def _cdiv(a, b):
    return -(-a // b)


def _autoencoder_kernel(n_layers, activations, *refs):
    """Fused MLP forward over one batch tile: n_layers x (matmul + bias + act).

    refs = (x_ref, w0, b0, w1, b1, ..., w_{L-1}, b_{L-1}, out_ref)
    activations[i] in {"relu", "sigmoid", None}
    x / weights are bf16 (MXU inputs); accumulation + elementwise math in f32.
    """
    x_ref = refs[0]
    out_ref = refs[-1]
    param_refs = refs[1:-1]

    h = x_ref[...]                            # bf16 straight off the DMA
    for i in range(n_layers):
        w = param_refs[2 * i][...]            # bf16 [in_pad, out_pad]
        b = param_refs[2 * i + 1][...]        # f32  [1, out_pad]
        # bf16 operands into the MXU, f32 accumulation (first layer: astype is
        # a no-op since h is already bf16); bias/act on VPU/EUP in f32.
        h = jnp.dot(h.astype(jnp.bfloat16), w,
                    preferred_element_type=jnp.float32) + b
        act = activations[i]
        if act == "relu":
            h = jnp.maximum(h, 0.0)
        elif act == "sigmoid":
            h = jax.nn.sigmoid(h)
    out_ref[...] = h.astype(out_ref.dtype)


def make_autoencoder_params(key, n_input, n_nodes, w_dtype=jnp.bfloat16,
                            lane_multiple=_LANE):
    """Build (weights, biases, activations) matching the PyTorch AutoEncoder.

    Encoder: Linear(n_input, n_nodes[0]) + ReLU,
             [Linear(n_nodes[i], n_nodes[i+1]) + ReLU for i in 0..len-3],
             Linear(n_nodes[-2], n_nodes[-1])           (no activation)
    Decoder: [Linear(n_nodes[i], n_nodes[i-1]) + ReLU for i in len-1..1],
             Linear(n_nodes[0], n_input) + Sigmoid

    Weights/biases are zero-padded so every feature dim is a multiple of
    `lane_multiple` (128 default; use 256 on v6e/v7x if real dims are >=192);
    weights are stored in bf16, biases in f32.
    """
    layer_dims = []
    activations = []

    # encoder
    layer_dims.append((n_input, n_nodes[0]))
    activations.append("relu")
    for idx in range(len(n_nodes) - 2):
        layer_dims.append((n_nodes[idx], n_nodes[idx + 1]))
        activations.append("relu")
    layer_dims.append((n_nodes[-2], n_nodes[-1]))
    activations.append(None)

    # decoder
    for idx in range(len(n_nodes) - 1, 0, -1):
        layer_dims.append((n_nodes[idx], n_nodes[idx - 1]))
        activations.append("relu")
    layer_dims.append((n_nodes[0], n_input))
    activations.append("sigmoid")

    weights, biases = [], []
    for (fan_in, fan_out) in layer_dims:
        key, kw, kb = jax.random.split(key, 3)
        bound = 1.0 / math.sqrt(fan_in)
        w = jax.random.uniform(kw, (fan_in, fan_out), jnp.float32, -bound, bound)
        b = jax.random.uniform(kb, (1, fan_out), jnp.float32, -bound, bound)
        in_pad = _round_up(fan_in, lane_multiple)
        out_pad = _round_up(fan_out, lane_multiple)
        w = jnp.pad(w, ((0, in_pad - fan_in), (0, out_pad - fan_out)))
        b = jnp.pad(b, ((0, 0), (0, out_pad - fan_out)))
        weights.append(w.astype(w_dtype))
        biases.append(b)  # f32
    return weights, biases, tuple(activations)


def autoencoder_forward(x, weights, biases, activations, *, block_batch=512,
                        min_grid_steps=2, out_dtype=jnp.bfloat16,
                        single_buffer_params=True, unpad_output=True):
    """Full AutoEncoder forward in one Pallas kernel, tiled over the batch.

    x: [batch, n_input] (unpadded). Weights/biases are the padded params from
    make_autoencoder_params. Returns [batch, n_input] in `out_dtype`.
    """
    n_layers = len(weights)
    batch, n_feat = x.shape
    d_in_pad = weights[0].shape[0]
    d_out_pad = weights[-1].shape[1]

    # Choose grid steps first (>= min_grid_steps so v7x's 2 TCs both get work
    # and the DMA pipeline has something to overlap), then the smallest
    # sublane-aligned tile that covers the batch -> minimal batch padding.
    steps = max(min_grid_steps, _cdiv(batch, block_batch))
    tb = _round_up(_cdiv(batch, steps), _SUBLANE)
    b_pad = _round_up(batch, tb)
    grid = (b_pad // tb,)

    # Single fused pad+cast: the only per-grid-step input DMA is streamed bf16.
    x_pad = jnp.pad(x.astype(jnp.bfloat16),
                    ((0, b_pad - batch), (0, d_in_pad - n_feat)))

    kernel = functools.partial(_autoencoder_kernel, n_layers, activations)

    param_bytes = sum(int(p.size) * p.dtype.itemsize
                      for ps in (weights, biases) for p in ps)
    cost = pl.CostEstimate(
        flops=2 * b_pad * sum(w.shape[0] * w.shape[1] for w in weights),
        transcendentals=b_pad * d_out_pad,  # final sigmoid on the EUP
        bytes_accessed=(int(x_pad.size) * x_pad.dtype.itemsize
                        + b_pad * d_out_pad * jnp.dtype(out_dtype).itemsize
                        + param_bytes),
    )

    operands = [x_pad]
    for w, b in zip(weights, biases):
        operands.append(w)
        operands.append(b)

    def _build_and_run(buffer_params_once):
        # x / out are tiled along the batch grid axis; every weight/bias uses a
        # constant index_map -> DMA'd once, VMEM-resident across batch tiles.
        in_specs = [pl.BlockSpec((tb, d_in_pad), lambda i: (i, 0))]
        for w, b in zip(weights, biases):
            if buffer_params_once:
                # constant index_map -> one VMEM copy is enough (halves the
                # resident param footprint; matters under v7x's 64 MiB VMEM).
                in_specs.append(pl.BlockSpec(w.shape, lambda i: (0, 0),
                                             pipeline_mode=pl.Buffered(1)))
                in_specs.append(pl.BlockSpec(b.shape, lambda i: (0, 0),
                                             pipeline_mode=pl.Buffered(1)))
            else:
                in_specs.append(pl.BlockSpec(w.shape, lambda i: (0, 0)))
                in_specs.append(pl.BlockSpec(b.shape, lambda i: (0, 0)))
        out_spec = pl.BlockSpec((tb, d_out_pad), lambda i: (i, 0))

        call = pl.pallas_call(
            kernel,
            out_shape=jax.ShapeDtypeStruct((b_pad, d_out_pad), out_dtype),
            grid_spec=pltpu.PrefetchScalarGridSpec(
                num_scalar_prefetch=0,
                grid=grid,
                in_specs=in_specs,
                out_specs=out_spec,
            ),
            compiler_params=pltpu.CompilerParams(
                # batch tiles are independent -> pipeline + megacore sharding
                dimension_semantics=("parallel",),
                # safe on all generations (v7x: 64 MiB physical)
                vmem_limit_bytes=32 * 1024 * 1024,
            ),
            cost_estimate=cost,
        )
        return call(*operands)

    if single_buffer_params and hasattr(pl, "Buffered"):
        try:
            out_padded = jax.block_until_ready(_build_and_run(True))
        except Exception:
            # installed JAX rejects single-buffered inputs -> default pipelining
            out_padded = _build_and_run(False)
    else:
        out_padded = _build_and_run(False)

    if not unpad_output:
        return out_padded            # padded bf16 slab, no extra HBM pass
    return out_padded[:batch, :n_feat]


def autoencoder_reference(x, weights, biases, activations, out_dtype=jnp.bfloat16):
    """Plain-JAX reference mirroring the kernel math (bf16 MXU inputs, f32 acc)."""
    batch, n_feat = x.shape
    d_in_pad = weights[0].shape[0]
    h = jnp.pad(x.astype(jnp.bfloat16), ((0, 0), (0, d_in_pad - n_feat)))
    for w, b, act in zip(weights, biases, activations):
        h = jnp.dot(h.astype(jnp.bfloat16), w,
                    preferred_element_type=jnp.float32) + b
        if act == "relu":
            h = jnp.maximum(h, 0.0)
        elif act == "sigmoid":
            h = jax.nn.sigmoid(h)
    return h[:, :n_feat].astype(out_dtype)


if __name__ == "__main__":
    key = jax.random.PRNGKey(0)

    # Small shapes consistent with the module: AutoEncoder(n_input=32, n_nodes=[16, 8])
    batch = 32
    n_input = 32
    n_nodes = [16, 8]

    key, kx, kp = jax.random.split(key, 3)
    x = jax.random.normal(kx, (batch, n_input), jnp.float32)
    weights, biases, activations = make_autoencoder_params(kp, n_input, n_nodes)

    # min_grid_steps=2 -> tb=16, grid=(2,): exercises the multi-step pipeline /
    # megacore path even at this toy batch size.
    out = autoencoder_forward(x, weights, biases, activations)
    out = jax.block_until_ready(out)

    ref = autoencoder_reference(x, weights, biases, activations)
    assert out.shape == (batch, n_input), out.shape
    assert jnp.allclose(out.astype(jnp.float32), ref.astype(jnp.float32),
                        atol=2e-2, rtol=2e-2), "mismatch vs reference"

    print("KERNEL_OK")
</pallas_src>

<mosaic_0001>
module attributes {stable_mosaic.version = 11 : i64} {
  func.func @_autoencoder_kernel(%arg0: i32, %arg1: memref<16x128xbf16, #tpu.memory_space<vmem>>, %arg2: memref<128x128xbf16, #tpu.memory_space<vmem>>, %arg3: memref<1x128xf32, #tpu.memory_space<vmem>>, %arg4: memref<128x128xbf16, #tpu.memory_space<vmem>>, %arg5: memref<1x128xf32, #tpu.memory_space<vmem>>, %arg6: memref<128x128xbf16, #tpu.memory_space<vmem>>, %arg7: memref<1x128xf32, #tpu.memory_space<vmem>>, %arg8: memref<128x128xbf16, #tpu.memory_space<vmem>>, %arg9: memref<1x128xf32, #tpu.memory_space<vmem>>, %arg10: memref<16x128xbf16, #tpu.memory_space<vmem>>) attributes {dimension_semantics = [#tpu.dimension_semantics<parallel>], iteration_bounds = array<i64: 2>, scalar_prefetch = 0 : i64, scratch_operands = 0 : i64, tpu.core_type = #tpu.core_type<tc>, window_params = [{transform_indices = @transform_0, window_bounds = array<i64: 16, 128>}, {pipeline_mode = #tpu.pipeline_mode<synchronous>, transform_indices = @transform_1, window_bounds = array<i64: 128, 128>}, {pipeline_mode = #tpu.pipeline_mode<synchronous>, transform_indices = @transform_2, window_bounds = array<i64: 1, 128>}, {pipeline_mode = #tpu.pipeline_mode<synchronous>, transform_indices = @transform_3, window_bounds = array<i64: 128, 128>}, {pipeline_mode = #tpu.pipeline_mode<synchronous>, transform_indices = @transform_4, window_bounds = array<i64: 1, 128>}, {pipeline_mode = #tpu.pipeline_mode<synchronous>, transform_indices = @transform_5, window_bounds = array<i64: 128, 128>}, {pipeline_mode = #tpu.pipeline_mode<synchronous>, transform_indices = @transform_6, window_bounds = array<i64: 1, 128>}, {pipeline_mode = #tpu.pipeline_mode<synchronous>, transform_indices = @transform_7, window_bounds = array<i64: 128, 128>}, {pipeline_mode = #tpu.pipeline_mode<synchronous>, transform_indices = @transform_8, window_bounds = array<i64: 1, 128>}, {transform_indices = @transform_9, window_bounds = array<i64: 16, 128>}]} {
    %c0 = arith.constant 0 : index
    %c0_0 = arith.constant 0 : index
    %0 = vector.load %arg1[%c0, %c0_0] : memref<16x128xbf16, #tpu.memory_space<vmem>>, vector<16x128xbf16>
    %c0_1 = arith.constant 0 : index
    %c0_2 = arith.constant 0 : index
    %1 = vector.load %arg2[%c0_1, %c0_2] : memref<128x128xbf16, #tpu.memory_space<vmem>>, vector<128x128xbf16>
    %c0_3 = arith.constant 0 : index
    %c0_4 = arith.constant 0 : index
    %2 = vector.load %arg3[%c0_3, %c0_4] : memref<1x128xf32, #tpu.memory_space<vmem>>, vector<1x128xf32>
    %cst = arith.constant dense<0.000000e+00> : vector<16x128xf32>
    %3 = tpu.matmul %0, %1, %cst {dimension_numbers = #tpu.dot_dimension_numbers<[1], [0], [0], [1], [0, 0, 1, 1], [], []>} : vector<16x128xbf16>, vector<128x128xbf16>, vector<16x128xf32> -> vector<16x128xf32>
    %4 = vector.broadcast %2 : vector<1x128xf32> to vector<16x128xf32>
    %5 = arith.addf %3, %4 : vector<16x128xf32>
    %cst_5 = arith.constant 0.000000e+00 : f32
    %6 = vector.broadcast %cst_5 : f32 to vector<16x128xf32>
    %7 = arith.maximumf %5, %6 : vector<16x128xf32>
    %c0_6 = arith.constant 0 : index
    %c0_7 = arith.constant 0 : index
    %8 = vector.load %arg4[%c0_6, %c0_7] : memref<128x128xbf16, #tpu.memory_space<vmem>>, vector<128x128xbf16>
    %c0_8 = arith.constant 0 : index
    %c0_9 = arith.constant 0 : index
    %9 = vector.load %arg5[%c0_8, %c0_9] : memref<1x128xf32, #tpu.memory_space<vmem>>, vector<1x128xf32>
    %10 = arith.truncf %7 : vector<16x128xf32> to vector<16x128xbf16>
    %cst_10 = arith.constant dense<0.000000e+00> : vector<16x128xf32>
    %11 = tpu.matmul %10, %8, %cst_10 {dimension_numbers = #tpu.dot_dimension_numbers<[1], [0], [0], [1], [0, 0, 1, 1], [], []>} : vector<16x128xbf16>, vector<128x128xbf16>, vector<16x128xf32> -> vector<16x128xf32>
    %12 = vector.broadcast %9 : vector<1x128xf32> to vector<16x128xf32>
    %13 = arith.addf %11, %12 : vector<16x128xf32>
    %c0_11 = arith.constant 0 : index
    %c0_12 = arith.constant 0 : index
    %14 = vector.load %arg6[%c0_11, %c0_12] : memref<128x128xbf16, #tpu.memory_space<vmem>>, vector<128x128xbf16>
    %c0_13 = arith.constant 0 : index
    %c0_14 = arith.constant 0 : index
    %15 = vector.load %arg7[%c0_13, %c0_14] : memref<1x128xf32, #tpu.memory_space<vmem>>, vector<1x128xf32>
    %16 = arith.truncf %13 : vector<16x128xf32> to vector<16x128xbf16>
    %cst_15 = arith.constant dense<0.000000e+00> : vector<16x128xf32>
    %17 = tpu.matmul %16, %14, %cst_15 {dimension_numbers = #tpu.dot_dimension_numbers<[1], [0], [0], [1], [0, 0, 1, 1], [], []>} : vector<16x128xbf16>, vector<128x128xbf16>, vector<16x128xf32> -> vector<16x128xf32>
    %18 = vector.broadcast %15 : vector<1x128xf32> to vector<16x128xf32>
    %19 = arith.addf %17, %18 : vector<16x128xf32>
    %cst_16 = arith.constant 0.000000e+00 : f32
    %20 = vector.broadcast %cst_16 : f32 to vector<16x128xf32>
    %21 = arith.maximumf %19, %20 : vector<16x128xf32>
    %c0_17 = arith.constant 0 : index
    %c0_18 = arith.constant 0 : index
    %22 = vector.load %arg8[%c0_17, %c0_18] : memref<128x128xbf16, #tpu.memory_space<vmem>>, vector<128x128xbf16>
    %c0_19 = arith.constant 0 : index
    %c0_20 = arith.constant 0 : index
    %23 = vector.load %arg9[%c0_19, %c0_20] : memref<1x128xf32, #tpu.memory_space<vmem>>, vector<1x128xf32>
    %24 = arith.truncf %21 : vector<16x128xf32> to vector<16x128xbf16>
    %cst_21 = arith.constant dense<0.000000e+00> : vector<16x128xf32>
    %25 = tpu.matmul %24, %22, %cst_21 {dimension_numbers = #tpu.dot_dimension_numbers<[1], [0], [0], [1], [0, 0, 1, 1], [], []>} : vector<16x128xbf16>, vector<128x128xbf16>, vector<16x128xf32> -> vector<16x128xf32>
    %26 = vector.broadcast %23 : vector<1x128xf32> to vector<16x128xf32>
    %27 = arith.addf %25, %26 : vector<16x128xf32>
    %28 = arith.negf %27 : vector<16x128xf32>
    %29 = math.exp %28 : vector<16x128xf32>
    %cst_22 = arith.constant 1.000000e+00 : f32
    %30 = vector.broadcast %cst_22 : f32 to vector<16x128xf32>
    %31 = arith.addf %30, %29 : vector<16x128xf32>
    %32 = arith.divf %30, %31 : vector<16x128xf32>
    %33 = arith.truncf %32 : vector<16x128xf32> to vector<16x128xbf16>
    %c0_23 = arith.constant 0 : index
    %c0_24 = arith.constant 0 : index
    %34 = vector.load %arg10[%c0_23, %c0_24] : memref<16x128xbf16, #tpu.memory_space<vmem>>, vector<16x128xbf16>
    tpu.vector_store %arg10[%c0_23, %c0_24], %33 {strides = array<i32>} : memref<16x128xbf16, #tpu.memory_space<vmem>>, vector<16x128xbf16>,
    return
  }
  func.func @transform_0(%arg0: i32) -> (i32, i32) {
    %c0_i32 = arith.constant 0 : i32
    %c0_i32_0 = arith.constant 0 : i32
    return %arg0, %c0_i32 : i32, i32
  }
  func.func @transform_1(%arg0: i32) -> (i32, i32) {
    %c0_i32 = arith.constant 0 : i32
    %c0_i32_0 = arith.constant 0 : i32
    %c0_i32_1 = arith.constant 0 : i32
    return %c0_i32, %c0_i32_0 : i32, i32
  }
  func.func @transform_2(%arg0: i32) -> (i32, i32) {
    %c0_i32 = arith.constant 0 : i32
    %c0_i32_0 = arith.constant 0 : i32
    %c0_i32_1 = arith.constant 0 : i32
    return %c0_i32, %c0_i32_0 : i32, i32
  }
  func.func @transform_3(%arg0: i32) -> (i32, i32) {
    %c0_i32 = arith.constant 0 : i32
    %c0_i32_0 = arith.constant 0 : i32
    %c0_i32_1 = arith.constant 0 : i32
    return %c0_i32, %c0_i32_0 : i32, i32
  }
  func.func @transform_4(%arg0: i32) -> (i32, i32) {
    %c0_i32 = arith.constant 0 : i32
    %c0_i32_0 = arith.constant 0 : i32
    %c0_i32_1 = arith.constant 0 : i32
    return %c0_i32, %c0_i32_0 : i32, i32
  }
  func.func @transform_5(%arg0: i32) -> (i32, i32) {
    %c0_i32 = arith.constant 0 : i32
    %c0_i32_0 = arith.constant 0 : i32
    %c0_i32_1 = arith.constant 0 : i32
    return %c0_i32, %c0_i32_0 : i32, i32
  }
  func.func @transform_6(%arg0: i32) -> (i32, i32) {
    %c0_i32 = arith.constant 0 : i32
    %c0_i32_0 = arith.constant 0 : i32
    %c0_i32_1 = arith.constant 0 : i32
    return %c0_i32, %c0_i32_0 : i32, i32
  }
  func.func @transform_7(%arg0: i32) -> (i32, i32) {
    %c0_i32 = arith.constant 0 : i32
    %c0_i32_0 = arith.constant 0 : i32
    %c0_i32_1 = arith.constant 0 : i32
    return %c0_i32, %c0_i32_0 : i32, i32
  }
  func.func @transform_8(%arg0: i32) -> (i32, i32) {
    %c0_i32 = arith.constant 0 : i32
    %c0_i32_0 = arith.constant 0 : i32
    %c0_i32_1 = arith.constant 0 : i32
    return %c0_i32, %c0_i32_0 : i32, i32
  }
  func.func @transform_9(%arg0: i32) -> (i32, i32) {
    %c0_i32 = arith.constant 0 : i32
    %c0_i32_0 = arith.constant 0 : i32
    return %arg0, %c0_i32 : i32, i32
  }
}

module attributes {stable_mosaic.version = 11 : i64} {
  func.func @_autoencoder_kernel(%arg0: i32, %arg1: memref<16x128xbf16, #tpu.memory_space<vmem>>, %arg2: memref<128x128xbf16, #tpu.memory_space<vmem>>, %arg3: memref<1x128xf32, #tpu.memory_space<vmem>>, %arg4: memref<128x128xbf16, #tpu.memory_space<vmem>>, %arg5: memref<1x128xf32, #tpu.memory_space<vmem>>, %arg6: memref<128x128xbf16, #tpu.memory_space<vmem>>, %arg7: memref<1x128xf32, #tpu.memory_space<vmem>>, %arg8: memref<128x128xbf16, #tpu.memory_space<vmem>>, %arg9: memref<1x128xf32, #tpu.memory_space<vmem>>, %arg10: memref<16x128xbf16, #tpu.memory_space<vmem>>) attributes {dimension_semantics = [#tpu.dimension_semantics<parallel>], iteration_bounds = array<i64: 2>, scalar_prefetch = 0 : i64, scratch_operands = 0 : i64, tpu.core_type = #tpu.core_type<tc>, window_params = [{transform_indices = @transform_0, window_bounds = array<i64: 16, 128>}, {pipeline_mode = #tpu.pipeline_mode<synchronous>, transform_indices = @transform_1, window_bounds = array<i64: 128, 128>}, {pipeline_mode = #tpu.pipeline_mode<synchronous>, transform_indices = @transform_2, window_bounds = array<i64: 1, 128>}, {pipeline_mode = #tpu.pipeline_mode<synchronous>, transform_indices = @transform_3, window_bounds = array<i64: 128, 128>}, {pipeline_mode = #tpu.pipeline_mode<synchronous>, transform_indices = @transform_4, window_bounds = array<i64: 1, 128>}, {pipeline_mode = #tpu.pipeline_mode<synchronous>, transform_indices = @transform_5, window_bounds = array<i64: 128, 128>}, {pipeline_mode = #tpu.pipeline_mode<synchronous>, transform_indices = @transform_6, window_bounds = array<i64: 1, 128>}, {pipeline_mode = #tpu.pipeline_mode<synchronous>, transform_indices = @transform_7, window_bounds = array<i64: 128, 128>}, {pipeline_mode = #tpu.pipeline_mode<synchronous>, transform_indices = @transform_8, window_bounds = array<i64: 1, 128>}, {transform_indices = @transform_9, window_bounds = array<i64: 16, 128>}]} {
    %c0 = arith.constant 0 : index
    %c0_0 = arith.constant 0 : index
    %0 = vector.load %arg1[%c0, %c0_0] : memref<16x128xbf16, #tpu.memory_space<vmem>>, vector<16x128xbf16>
    %c0_1 = arith.constant 0 : index
    %c0_2 = arith.constant 0 : index
    %1 = vector.load %arg2[%c0_1, %c0_2] : memref<128x128xbf16, #tpu.memory_space<vmem>>, vector<128x128xbf16>
    %c0_3 = arith.constant 0 : index
    %c0_4 = arith.constant 0 : index
    %2 = vector.load %arg3[%c0_3, %c0_4] : memref<1x128xf32, #tpu.memory_space<vmem>>, vector<1x128xf32>
    %cst = arith.constant dense<0.000000e+00> : vector<16x128xf32>
    %3 = tpu.matmul %0, %1, %cst {dimension_numbers = #tpu.dot_dimension_numbers<[1], [0], [0], [1], [0, 0, 1, 1], [], []>} : vector<16x128xbf16>, vector<128x128xbf16>, vector<16x128xf32> -> vector<16x128xf32>
    %4 = vector.broadcast %2 : vector<1x128xf32> to vector<16x128xf32>
    %5 = arith.addf %3, %4 : vector<16x128xf32>
    %cst_5 = arith.constant 0.000000e+00 : f32
    %6 = vector.broadcast %cst_5 : f32 to vector<16x128xf32>
    %7 = arith.maximumf %5, %6 : vector<16x128xf32>
    %c0_6 = arith.constant 0 : index
    %c0_7 = arith.constant 0 : index
    %8 = vector.load %arg4[%c0_6, %c0_7] : memref<128x128xbf16, #tpu.memory_space<vmem>>, vector<128x128xbf16>
    %c0_8 = arith.constant 0 : index
    %c0_9 = arith.constant 0 : index
    %9 = vector.load %arg5[%c0_8, %c0_9] : memref<1x128xf32, #tpu.memory_space<vmem>>, vector<1x128xf32>
    %10 = arith.truncf %7 : vector<16x128xf32> to vector<16x128xbf16>
    %cst_10 = arith.constant dense<0.000000e+00> : vector<16x128xf32>
    %11 = tpu.matmul %10, %8, %cst_10 {dimension_numbers = #tpu.dot_dimension_numbers<[1], [0], [0], [1], [0, 0, 1, 1], [], []>} : vector<16x128xbf16>, vector<128x128xbf16>, vector<16x128xf32> -> vector<16x128xf32>
    %12 = vector.broadcast %9 : vector<1x128xf32> to vector<16x128xf32>
    %13 = arith.addf %11, %12 : vector<16x128xf32>
    %c0_11 = arith.constant 0 : index
    %c0_12 = arith.constant 0 : index
    %14 = vector.load %arg6[%c0_11, %c0_12] : memref<128x128xbf16, #tpu.memory_space<vmem>>, vector<128x128xbf16>
    %c0_13 = arith.constant 0 : index
    %c0_14 = arith.constant 0 : index
    %15 = vector.load %arg7[%c0_13, %c0_14] : memref<1x128xf32, #tpu.memory_space<vmem>>, vector<1x128xf32>
    %16 = arith.truncf %13 : vector<16x128xf32> to vector<16x128xbf16>
    %cst_15 = arith.constant dense<0.000000e+00> : vector<16x128xf32>
    %17 = tpu.matmul %16, %14, %cst_15 {dimension_numbers = #tpu.dot_dimension_numbers<[1], [0], [0], [1], [0, 0, 1, 1], [], []>} : vector<16x128xbf16>, vector<128x128xbf16>, vector<16x128xf32> -> vector<16x128xf32>
    %18 = vector.broadcast %15 : vector<1x128xf32> to vector<16x128xf32>
    %19 = arith.addf %17, %18 : vector<16x128xf32>
    %cst_16 = arith.constant 0.000000e+00 : f32
    %20 = vector.broadcast %cst_16 : f32 to vector<16x128xf32>
    %21 = arith.maximumf %19, %20 : vector<16x128xf32>
    %c0_17 = arith.constant 0 : index
    %c0_18 = arith.constant 0 : index
    %22 = vector.load %arg8[%c0_17, %c0_18] : memref<128x128xbf16, #tpu.memory_space<vmem>>, vector<128x128xbf16>
    %c0_19 = arith.constant 0 : index
    %c0_20 = arith.constant 0 : index
    %23 = vector.load %arg9[%c0_19, %c0_20] : memref<1x128xf32, #tpu.memory_space<vmem>>, vector<1x128xf32>
    %24 = arith.truncf %21 : vector<16x128xf32> to vector<16x128xbf16>
    %cst_21 = arith.constant dense<0.000000e+00> : vector<16x128xf32>
    %25 = tpu.matmul %24, %22, %cst_21 {dimension_numbers = #tpu.dot_dimension_numbers<[1], [0], [0], [1], [0, 0, 1, 1], [], []>} : vector<16x128xbf16>, vector<128x128xbf16>, vector<16x128xf32> -> vector<16x128xf32>
    %26 = vector.broadcast %23 : vector<1x128xf32> to vector<16x128xf32>
    %27 = arith.addf %25, %26 : vector<16x128xf32>
    %28 = arith.negf %27 : vector<16x128xf32>
    %29 = math.exp %28 : vector<16x128xf32>
    %cst_22 = arith.constant 1.000000e+00 : f32
    %30 = vector.broadcast %cst_22 : f32 to vector<16x128xf32>
    %31 = arith.addf %30, %29 : vector<16x128xf32>
    %32 = arith.divf %30, %31 : vector<16x128xf32>
    %33 = arith.truncf %32 : vector<16x128xf32> to vector<16x128xbf16>
    %c0_23 = arith.constant 0 : index
    %c0_24 = arith.constant 0 : index
    %34 = vector.load %arg10[%c0_23, %c0_24] : memref<16x128xbf16, #tpu.memory_space<vmem>>, vector<16x128xbf16>
    tpu.vector_store %arg10[%c0_23, %c0_24], %33 {strides = array<i32>} : memref<16x128xbf16, #tpu.memory_space<vmem>>, vector<16x128xbf16>,
    return
  }
  func.func @transform_0(%arg0: i32) -> (i32, i32) {
    %c0_i32 = arith.constant 0 : i32
    %c0_i32_0 = arith.constant 0 : i32
    return %arg0, %c0_i32 : i32, i32
  }
  func.func @transform_1(%arg0: i32) -> (i32, i32) {
    %c0_i32 = arith.constant 0 : i32
    %c0_i32_0 = arith.constant 0 : i32
    %c0_i32_1 = arith.constant 0 : i32
    return %c0_i32, %c0_i32_0 : i32, i32
  }
  func.func @transform_2(%arg0: i32) -> (i32, i32) {
    %c0_i32 = arith.constant 0 : i32
    %c0_i32_0 = arith.constant 0 : i32
    %c0_i32_1 = arith.constant 0 : i32
    return %c0_i32, %c0_i32_0 : i32, i32
  }
  func.func @transform_3(%arg0: i32) -> (i32, i32) {
    %c0_i32 = arith.constant 0 : i32
    %c0_i32_0 = arith.constant 0 : i32
    %c0_i32_1 = arith.constant 0 : i32
    return %c0_i32, %c0_i32_0 : i32, i32
  }
  func.func @transform_4(%arg0: i32) -> (i32, i32) {
    %c0_i32 = arith.constant 0 : i32
    %c0_i32_0 = arith.constant 0 : i32
    %c0_i32_1 = arith.constant 0 : i32
    return %c0_i32, %c0_i32_0 : i32, i32
  }
  func.func @transform_5(%arg0: i32) -> (i32, i32) {
    %c0_i32 = arith.constant 0 : i32
    %c0_i32_0 = arith.constant 0 : i32
    %c0_i32_1 = arith.constant 0 : i32
    return %c0_i32, %c0_i32_0 : i32, i32
  }
  func.func @transform_6(%arg0: i32) -> (i32, i32) {
    %c0_i32 = arith.constant 0 : i32
    %c0_i32_0 = arith.constant 0 : i32
    %c0_i32_1 = arith.constant 0 : i32
    return %c0_i32, %c0_i32_0 : i32, i32
  }
  func.func @transform_7(%arg0: i32) -> (i32, i32) {
    %c0_i32 = arith.constant 0 : i32
    %c0_i32_0 = arith.constant 0 : i32
    %c0_i32_1 = arith.constant 0 : i32
    return %c0_i32, %c0_i32_0 : i32, i32
  }
  func.func @transform_8(%arg0: i32) -> (i32, i32) {
    %c0_i32 = arith.constant 0 : i32
    %c0_i32_0 = arith.constant 0 : i32
    %c0_i32_1 = arith.constant 0 : i32
    return %c0_i32, %c0_i32_0 : i32, i32
  }
  func.func @transform_9(%arg0: i32) -> (i32, i32) {
    %c0_i32 = arith.constant 0 : i32
    %c0_i32_0 = arith.constant 0 : i32
    return %arg0, %c0_i32 : i32, i32
  }
}

</mosaic_0001>

<bundles_post_ra>
// kernel: tpu_custom_call.1
= control target key start
LH: loop header
LB: loop body
LE: loop exit
PB: predicated region body
PF: predicated region fallthrough
CT: control target
= control target key end

     0   :  { %s1975_s0 = inlined_call_operand.hbm [shape: bf16[32,128], index: 0, kind: input, shape index: {}]   ;;  %s1976_s1 = inlined_call_operand.hbm [shape: bf16[128,128], index: 1, kind: input, shape index: {}]   ;;  %s1977_s2 = inlined_call_operand.vmem [shape: f32[1,128], index: 2, kind: input, shape index: {}]   ;;  %s1978_s3 = inlined_call_operand.hbm [shape: bf16[128,128], index: 3, kind: input, shape index: {}]   ;;  %s1979_s4 = inlined_call_operand.vmem [shape: f32[1,128], index: 4, kind: input, shape index: {}]   ;;  %s1980_s5 = inlined_call_operand.hbm [shape: bf16[128,128], index: 5, kind: input, shape index: {}]   ;;  %s1981_s6 = inlined_call_operand.vmem [shape: f32[1,128], index: 6, kind: input, shape index: {}]   ;;  %s1982_s7 = inlined_call_operand.hbm [shape: bf16[128,128], index: 7, kind: input, shape index: {}]   ;;  %s1983_s8 = inlined_call_operand.vmem [shape: f32[1,128], index: 8, kind: input, shape index: {}]   ;;  %s1984_s9 = inlined_call_operand.hbm [shape: bf16[32,128], index: 9, kind: output, shape index: {}]  }
   0x1   :  { %1991 = sst [smem:[#allocation18_spill]] %s1984_s9 }
   0x2   :  { %14 = vsyncpa [#allocation3], 0 }
   0x3   :  { %16 = vsyncpa [#allocation3 + $0x1], 0 }
   0x4   :  { %17 = vsyncpa [#allocation6], 0 }
   0x5   :  { %18 = vsyncpa [#allocation9], 0 }
   0x6   :  { %19 = vsyncpa [#allocation4], 0 }
   0x7   :  { %21 = vsyncpa [#allocation4 + $0x1], 0  ;;  %s1624_s30 = smov 0   ;;  %s1626_s10 = smov 0  }
   0x8   :  { %s1628_s11 = smov 0   ;;  %s1630_s12 = smov 0  }
   0x9 LB: > { %1992 = sst [smem:[#allocation16_spill]] %s1548_s30  ;;  %s1645_s13 = sadd.s32 4294967295, %s1560_s12   ;;  %s1560_s12 = sphi %s1630_s12, %s2016_s12   ;;  %s1556_s11 = sphi %s1628_s11, %s2015_s11   ;;  %s1552_s10 = sphi %s1626_s10, %s2014_s10   ;;  %s1548_s30 = sphi %s1624_s30, %s2013_s30  }
   0xa   : > { %s1022_s14 = sadd.s32 4294967294, %s1560_s12   ;;  %p47_p0 = scmp.ne.s32.totalorder %s1552_s10, %s1548_s30 }
   0xb   : > { %p1985_p1 = scmp.eq.s32.totalorder %s1645_s13, 0  ;;  %p245_p3 = scmp.eq.s32.totalorder %s1022_s14, 1 }
   0xc   : > { %p1023_p5 = scmp.ge.s32.totalorder %s1560_s12, 1  ;;  %p252_p7 = scmp.lt.s32.totalorder %s1560_s12, 3 }
   0xd   : > { %p1654_p4 = por %p1985_p1, %p47_p0  ;;  %p1659_p6 = por %p245_p3, %p47_p0 }
   0xe   : > { %p1664_p8 = pnand %p1023_p5, %p252_p7  ;;  %s1562_s18 = smov [#allocation5]  }
   0xf   : > { %s1993_s15 = scalar_select %p1654_p4, 1, 0 }
  0x10   : > { %s1994_s16 = scalar_select %p1659_p6, 1, 0 }
  0x11   : > { %s1996_s17 = scalar_select %p1664_p8, 1, 0 }
  0x12   : > { %1995 = sst [smem:[#allocation17_spill]] %s1994_s16  ;;  %s264_s19 = sshll.u32 %s1562_s18, 4  ;;  %s1668_s19 = int_to_ptr.vmem [resolvable:$true] %s264_s19 }
  0x13   : > { %p1230_p9 = pneg %p1664_p8  ;;  %s1563_s21 = smov [#allocation8]  }
  0x14   : > { %s296_s22 = sshll.u32 %s1563_s21, 4  ;;  %s1564_s23 = smov [#allocation7]   ;;  %s1679_s22 = int_to_ptr.vmem [resolvable:$true] %s296_s22 }
  0x15   : > { %p1675_p11 = pnand %p1230_p9, %p1985_p1  ;;  %s1681_s24 = sshll.u32 %s1564_s23, 4  ;;  %s281_s24 = int_to_ptr.vmem [resolvable:$true] %s1681_s24 }
  0x16   : > { %s1344_s27 = scalar_lea.hbm %s1976_s1, 1024 }
  0x17   : > { %p1345_p12 = scmp.ne.s32.totalorder %s1976_s1, %s1344_s27  ;;  %p1691_p13 = pneg %p1675_p11 }
  0x18   : > { %p1351_p5 = scmp.lt.u32.totalorder %s1344_s27, %s1976_s1 }
  0x19   : > { %p1347_p0 = pnand %p1691_p13, %p1345_p12 }
  0x1b   : > { %p1348_p3 = pneg %p1347_p0 }
  0x1d   : > { %p1353_p7 = pnand %p1351_p5, %p1348_p3 }
  0x1f   : > { %1356 = shalt.err (!%p1353_p7)
}
  0x20   : > { %s1357_s23 = scalar_lea.vmem %s1668_s19, 1024  ;;  %p1365_p2 = scmp.lt.s32.totalorder %s1668_s19, %s1668_s19 }
  0x21   : > { %p1358_p9 = scmp.ne.s32.totalorder %s1668_s19, %s1357_s23  ;;  %p1366_p6 = scmp.lt.s32.totalorder %s1357_s23, %s1357_s23 }
  0x23   : > { %p1360_p10 = pnand %p1358_p9, %p1691_p13  ;;  %p1367_p12 = por %p1366_p6, %p1365_p2 }
  0x25   : > { %p1361_p1 = pneg %p1360_p10 }
  0x27   : > { %p1368_p0 = pnand %p1367_p12, %p1361_p1 }
  0x29   : > { %1371 = shalt.err (!%p1368_p0)
}
  0x2a   : > { %s1565_s25 = smov 64   ;;  %s1566_s26 = smov 4  }
  0x2b   : > { %1233 = dma.hbm_to_vmem [thread:$0]  (!%p1675_p11), %s1976_s1, 1024, %s1668_s19, [#allocation6], %s1565_s25, %s1565_s25, %s1566_s26  }
  0x2c   : > { %s1372_s21 = scalar_lea.hbm %s1980_s5, 1024 }
  0x2d   : > { %p1373_p1 = scmp.ne.s32.totalorder %s1980_s5, %s1372_s21  ;;  %p1379_p10 = scmp.lt.u32.totalorder %s1372_s21, %s1980_s5 }
  0x2f   : > { %p1375_p2 = pnand %p1373_p1, %p1691_p13 }
  0x31   : > { %p1376_p6 = pneg %p1375_p2 }
  0x33   : > { %p1381_p3 = pnand %p1379_p10, %p1376_p6 }
  0x35   : > { %1384 = shalt.err (!%p1381_p3)
}
  0x36   : > { %s1385_s19 = scalar_lea.vmem %s1679_s22, 1024  ;;  %p1393_p12 = scmp.lt.s32.totalorder %s1679_s22, %s1679_s22 }
  0x37   : > { %p1386_p5 = scmp.ne.s32.totalorder %s1679_s22, %s1385_s19  ;;  %p1394_p0 = scmp.lt.s32.totalorder %s1385_s19, %s1385_s19 }
  0x39   : > { %p1388_p7 = pnand %p1386_p5, %p1691_p13  ;;  %p1395_p1 = por %p1394_p0, %p1393_p12 }
  0x3b   : > { %p1389_p9 = pneg %p1388_p7 }
  0x3d   : > { %p1396_p2 = pnand %p1395_p1, %p1389_p9 }
  0x3f   : > { %1399 = shalt.err (!%p1396_p2)
}
  0x40   : > { %1239 = dma.hbm_to_vmem [thread:$0]  (!%p1675_p11), %s1980_s5, 1024, %s1679_s22, [#allocation9], %s1565_s25, %s1565_s25, %s1566_s26  }
  0x41   : > { %s1400_s28 = scalar_lea.hbm %s1978_s3, 1024 }
  0x42   : > { %p1401_p6 = scmp.ne.s32.totalorder %s1978_s3, %s1400_s28  ;;  %p1407_p5 = scmp.lt.u32.totalorder %s1400_s28, %s1978_s3 }
  0x44   : > { %p1403_p10 = pnand %p1401_p6, %p1691_p13 }
  0x46   : > { %p1404_p3 = pneg %p1403_p10 }
  0x48   : > { %p1409_p7 = pnand %p1407_p5, %p1404_p3 }
  0x4a   : > { %1412 = shalt.err (!%p1409_p7)
}
  0x4b   : > { %s1413_s19 = scalar_lea.vmem %s281_s24, 1024  ;;  %p1421_p1 = scmp.lt.s32.totalorder %s281_s24, %s281_s24 }
  0x4c   : > { %p1414_p9 = scmp.ne.s32.totalorder %s281_s24, %s1413_s19  ;;  %p1422_p2 = scmp.lt.s32.totalorder %s1413_s19, %s1413_s19 }
  0x4e   : > { %p1416_p12 = pnand %p1414_p9, %p1691_p13  ;;  %p1423_p4 = por %p1422_p2, %p1421_p1 }
  0x50   : > { %p1417_p0 = pneg %p1416_p12 }
  0x52   : > { %p1424_p8 = pnand %p1423_p4, %p1417_p0 }
  0x54   : > { %1427 = shalt.err (!%p1424_p8)
}
  0x55   : > { %1236 = dma.hbm_to_vmem [thread:$0]  (!%p1675_p11), %s1978_s3, 1024, %s281_s24, [#allocation6], %s1565_s25, %s1565_s25, %s1566_s26  }
  0x56   : > { %s1567_s30 = smov [#allocation10]   ;;  %s1428_s29 = scalar_lea.hbm %s1982_s7, 1024 }
  0x57   : > { %s312_s16 = sshll.u32 %s1567_s30, 4  ;;  %p1429_p4 = scmp.ne.s32.totalorder %s1982_s7, %s1428_s29  ;;  %s313_s16 = int_to_ptr.vmem [resolvable:$true] %s312_s16 }
  0x58   : > { %p1435_p10 = scmp.lt.u32.totalorder %s1428_s29, %s1982_s7 }
  0x59   : > { %p1431_p8 = pnand %p1429_p4, %p1691_p13 }
  0x5b   : > { %p1432_p6 = pneg %p1431_p8 }
  0x5d   : > { %p1437_p3 = pnand %p1435_p10, %p1432_p6 }
  0x5f   : > { %1440 = shalt.err (!%p1437_p3)
}
  0x60   : > { %s1441_s24 = scalar_lea.vmem %s313_s16, 1024  ;;  %p1449_p12 = scmp.lt.s32.totalorder %s313_s16, %s313_s16 }
  0x61   : > { %p1442_p5 = scmp.ne.s32.totalorder %s313_s16, %s1441_s24  ;;  %p1450_p0 = scmp.lt.s32.totalorder %s1441_s24, %s1441_s24 }
  0x63   : > { %p1444_p7 = pnand %p1442_p5, %p1691_p13  ;;  %p1451_p1 = por %p1450_p0, %p1449_p12 }
  0x65   : > { %p1445_p9 = pneg %p1444_p7 }
  0x67   : > { %p1452_p2 = pnand %p1451_p1, %p1445_p9 }
  0x69   : > { %1455 = shalt.err (!%p1452_p2)
}
  0x6a   : > { %1242 = dma.hbm_to_vmem [thread:$0]  (!%p1675_p11), %s1982_s7, 1024, %s313_s16, [#allocation9], %s1565_s25, %s1565_s25, %s1566_s26  }
  0x6b   : > { %s1785_s14 = sadd.s32 1, %s1560_s12   ;;  %s34_s20 = sadd.s32 1, %s1556_s11 }
  0x6c   : > { %s31_s30 = ssub.s32 %s1560_s12, %s1785_s14  ;;  %p41_p13 = scmp.ne.s32.totalorder %s1556_s11, %s1552_s10 }
  0x6d   : > { %p32_p4 = scmp.eq.s32.totalorder %s31_s30, 0  ;;  %p42_p8 = scmp.eq.s32.totalorder %s1560_s12, 0 }
  0x6e   : > { %p1999_p6 = scmp.eq.s32.totalorder %s1645_s13, 1  ;;  %p1255_p3 = scmp.lt.s32.totalorder %s1560_s12, 2 }
  0x6f   : > { %s1801_s28 = scalar_select %p32_p4, %s1556_s11, %s34_s20  }
  0x70   : > { %p1795_p10 = por %p1999_p6, %p41_p13  ;;  %p43_p5 = por %p42_p8, %p41_p13 }
  0x71   : > { %s329_s29 = sand.u32 1, %s1556_s11   ;;  %s1085_s16 = sshll.u32 %s1560_s12, 7 }
  0x72   : > { %s1029_s18 = sshll.u32 %s329_s29, 3  ;;  %s1808_s19 = scalar_lea.hbm %s1975_s0, %s1085_s16 }
  0x73   : > { %s333_s24 = scalar_lea.vmem [#allocation2], %s1029_s18  ;;  %p1812_p11 = pnand %p1255_p3, %p43_p5 }
  0x74   : > { %s340_s22 = sshll.u32 %s333_s24, 4  ;;  %s1816_s20 = scalar_lea.sflag [#allocation3], %s329_s29  ;;  %s1810_s22 = int_to_ptr.vmem [resolvable:$true] %s340_s22 }
  0x75   : > { %s1456_s30 = scalar_lea.hbm %s1808_s19, 128  ;;  %p1458_p9 = pneg %p1812_p11 }
  0x76   : > { %p1457_p7 = scmp.ne.s32.totalorder %s1808_s19, %s1456_s30  ;;  %s1461_s21 = scalar_lea.hbm %s1975_s0, 256 }
  0x77   : > { %p1462_p1 = scmp.lt.u32.totalorder %s1808_s19, %s1975_s0  ;;  %p1463_p2 = scmp.lt.u32.totalorder %s1461_s21, %s1456_s30 }
  0x78   : > { %p1459_p12 = pnand %p1458_p9, %p1457_p7  ;;  %p1465_p4 = scmp.lt.u32.totalorder %s1456_s30, %s1808_s19 }
  0x79   : > { %p1464_p13 = por %p1463_p2, %p1462_p1 }
  0x7a   : > { %p1460_p0 = pneg %p1459_p12 }
  0x7b   : > { %p1466_p8 = por %p1465_p4, %p1464_p13 }
  0x7d   : > { %p1467_p6 = pnand %p1466_p8, %p1460_p0 }
  0x7f   : > { %1470 = shalt.err (!%p1467_p6)
}
  0x80   : > { %s1471_s29 = scalar_lea.vmem %s1810_s22, 128  ;;  %s1568_s18 = smov [#allocation2]  }
  0x81   : > { %p1472_p3 = scmp.ne.s32.totalorder %s1810_s22, %s1471_s29  ;;  %s1476_s16 = sshll.u32 %s1568_s18, 4  ;;  %s1477_s16 = int_to_ptr.vmem [resolvable:$false] %s1476_s16 }
  0x82   : > { %s1478_s23 = scalar_lea.vmem %s1477_s16, 256  ;;  %p1479_p12 = scmp.lt.s32.totalorder %s1810_s22, %s1477_s16 }
  0x83   : > { %p1474_p5 = pnand %p1472_p3, %p1458_p9  ;;  %p1480_p1 = scmp.lt.s32.totalorder %s1478_s23, %s1471_s29 }
  0x85   : > { %p1475_p7 = pneg %p1474_p5  ;;  %p1481_p2 = por %p1480_p1, %p1479_p12 }
  0x87   : > { %p1482_p13 = pnand %p1481_p2, %p1475_p7 }
  0x89   : > { %1485 = shalt.err (!%p1482_p13)
}
  0x8a   : > { %1246 = dma.hbm_to_vmem [thread:$0]  (!%p1812_p11), %s1808_s19, 128, %s1810_s22, %s1816_s20, %s1565_s25, %s1565_s25, %s1566_s26  }
  0x8b   : > { %p2002_p9 = scmp.ne.s32.totalorder %s1996_s17, 0 }
  0x8c   : > { %s1850_s30 = sand.u32 (!%p2002_p9), 1, %s1552_s10   ;;  %p2003_p0 = scmp.ne.s32.totalorder (!%p2002_p9), %s1993_s15, 0 }
  0x8d   : > { %352 = sbr.rel (%p2002_p9) target bundleno = 1107 (0x453), region = 56  ;;  %s1033_s21 = sshll.u32 (!%p2002_p9), %s1850_s30, 3 }
  0x8e   : > { %s355_s24 = scalar_lea.sflag (!%p2002_p9), [#allocation3], %s1850_s30  ;;  %s1856_s9 = scalar_lea.vmem (!%p2002_p9), [#allocation2], %s1033_s21 }
  0x94   : > { %1531 = dma.done.wait (%p2003_p0), %s355_s24, 128  }
  0x95   : > { %1533 = vsyncadd (%p2003_p0), %s355_s24, 4294967168  ;;  %p2004_p11 = scmp.eq.s32.totalorder %s1645_s13, 0 }
  0x97   : > { %1535 = dma.done.wait (%p2004_p11), [#allocation6], 2048   ;;  %p2005_p4 = pmov %p2004_p11 }
  0x99   : > { %1537 = vsyncadd (%p2005_p4), [#allocation6], 4294965248  ;;  %p2006_p8 = pmov %p2005_p4 }
  0x9a   : > { %p2007_p6 = pmov %p2005_p4 }
  0x9b   : > { %1539 = dma.done.wait (%p2006_p8), [#allocation9], 2048  }
  0x9c   : > { %1541 = vsyncadd (%p2007_p6), [#allocation9], 4294965248  ;;  %v1569_v0 = vmov 0.0   ;;  %vm1570_vm0 = vmmov 0   ;;  %v1303_v1 = vld [vmem:[#allocation5] sm:$0xff]   ;;  %v1304_v2 = vld [vmem:[#allocation5 + $0x8] sm:$0xff]  }
  0x9d   : > { %1130 = vmatprep.subr.bf16.mxu0 %v1569_v0  ;;  %1146 = vmatprep.mubr.msk.bf16.mxu0 %vm1570_vm0, %v1569_v0  ;;  %v1305_v3 = vld [vmem:[#allocation5 + $0x10] sm:$0xff]   ;;  %v1312_v4 = vld [vmem:[#allocation7] sm:$0xff]   ;;  %v1306_v5 = vld [vmem:[#allocation5 + $0x18] sm:$0xff]   ;;  %s1088_s18 = sshll.u32 %s1645_s13, 7  ;;  %s408_s16 = scalar_lea.vmem [#allocation11], %s1033_s21 }
  0x9e   : > { %1150 = vmatprep.subr.bf16.mxu1 %v1569_v0  ;;  %1166 = vmatprep.mubr.msk.bf16.mxu1 %vm1570_vm0, %v1569_v0  ;;  %v1313_v6 = vld [vmem:[#allocation7 + $0x8] sm:$0xff]   ;;  %v1307_v7 = vld [vmem:[#allocation5 + $0x20] sm:$0xff]   ;;  %v1314_v8 = vld [vmem:[#allocation7 + $0x10] sm:$0xff]   ;;  %s911_s23 = sshll.u32 %s408_s16, 4  ;;  %s2008_s15 = sld [smem:[#allocation18_spill]]  ;;  %s1931_s23 = int_to_ptr.vmem [resolvable:$true] %s911_s23 }
  0x9f   : > { %1131 = vmatpush3.bf16.msra.mxu0 %v1303_v1  ;;  %1151 = vmatpush3.bf16.msra.mxu1 %v1312_v4  ;;  %v1308_v9 = vld [vmem:[#allocation5 + $0x28] sm:$0xff]   ;;  %v1315_v10 = vld [vmem:[#allocation7 + $0x18] sm:$0xff]   ;;  %v1309_v11 = vld [vmem:[#allocation5 + $0x30] sm:$0xff]   ;;  %s898_s25 = scalar_lea.sflag [#allocation4], %s1850_s30  ;;  %s1486_s26 = scalar_lea.vmem %s1931_s23, 128 }
  0xa0   : > { %1132 = vmatprep.subr.bf16.mxu0 %v1569_v0  ;;  %1152 = vmatprep.subr.bf16.mxu1 %v1569_v0  ;;  %v1316_v12 = vld [vmem:[#allocation7 + $0x20] sm:$0xff]   ;;  %v1310_v13 = vld [vmem:[#allocation5 + $0x38] sm:$0xff]   ;;  %v1317_v14 = vld [vmem:[#allocation7 + $0x28] sm:$0xff]   ;;  %p1487_p3 = scmp.ne.s32.totalorder %s1931_s23, %s1486_s26  ;;  %s1571_s13 = smov [#allocation11]  }
  0xa1   : > { %v1311_v15 = vld [vmem:[%s1856_s9] sm:$0xff]   ;;  %v1320_v18 = vld [vmem:[#allocation8] sm:$0xff]   ;;  %v1321_v19 = vld [vmem:[#allocation8 + $0x8] sm:$0xff]   ;;  %s1490_s21 = sshll.u32 %s1571_s13, 4  ;;  %s1491_s21 = int_to_ptr.vmem [resolvable:$false] %s1490_s21 }
  0xa2   : > { %v1318_v16 = vld [vmem:[#allocation7 + $0x30] sm:$0xff]   ;;  %v1319_v17 = vld [vmem:[#allocation7 + $0x38] sm:$0xff]   ;;  %v1324_v22 = vld [vmem:[#allocation8 + $0x20] sm:$0xff]   ;;  %p1488_p5 = pnand %p1487_p3, %p1795_p10  ;;  %s1492_s19 = scalar_lea.vmem %s1491_s21, 256 }
  0xa3   : > { %1133 = vmatpush3.bf16.msra.mxu0 %v1304_v2  ;;  %1153 = vmatpush3.bf16.msra.mxu1 %v1313_v6  ;;  %v1322_v20 = vld [vmem:[#allocation8 + $0x10] sm:$0xff]   ;;  %v1323_v21 = vld [vmem:[#allocation8 + $0x18] sm:$0xff]   ;;  %v1325_v23 = vld [vmem:[#allocation8 + $0x28] sm:$0xff]   ;;  %p1493_p12 = scmp.lt.s32.totalorder %s1931_s23, %s1491_s21  ;;  %p1494_p1 = scmp.lt.s32.totalorder %s1492_s19, %s1486_s26 }
  0xa4   : > { %1134 = vmatprep.subr.bf16.mxu0 %v1569_v0  ;;  %1154 = vmatprep.subr.bf16.mxu1 %v1569_v0  ;;  %v1039_v24 = vld [vmem:[%s1977_s2] ss:$0 sm:$0xff]  ;;  %v1327_v35 = vld [vmem:[#allocation8 + $0x38] sm:$0xff]   ;;  %v1328_v36 = vld [vmem:[#allocation10] sm:$0xff]   ;;  %s1929_s17 = scalar_lea.hbm %s2008_s15, %s1088_s18  ;;  %p1489_p7 = pneg %p1488_p5 }
  0xa5   : > { %v1326_v34 = vld [vmem:[#allocation8 + $0x30] sm:$0xff]   ;;  %v1329_v37 = vld [vmem:[#allocation10 + $0x8] sm:$0xff]   ;;  %v1331_v39 = vld [vmem:[#allocation10 + $0x18] sm:$0xff]   ;;  %p1495_p2 = por %p1494_p1, %p1493_p12 }
  0xa6   : > { %v1330_v38 = vld [vmem:[#allocation10 + $0x10] sm:$0xff]   ;;  %v1332_v40 = vld [vmem:[#allocation10 + $0x20] sm:$0xff]   ;;  %v1333_v41 = vld [vmem:[#allocation10 + $0x28] sm:$0xff]  }
  0xa7   : > { %1135 = vmatpush3.bf16.msra.mxu0 %v1305_v3  ;;  %1155 = vmatpush3.bf16.msra.mxu1 %v1314_v8  ;;  %v1049_v42 = vld [vmem:[%s1979_s4] ss:$0 sm:$0xff]  ;;  %v1335_v51 = vld [vmem:[#allocation10 + $0x38] sm:$0xff]   ;;  %p1496_p13 = pnand %p1495_p2, %p1489_p7 }
  0xa8   : > { %1136 = vmatprep.subr.bf16.mxu0 %v1569_v0  ;;  %1156 = vmatprep.subr.bf16.mxu1 %v1569_v0  ;;  %v1334_v50 = vld [vmem:[#allocation10 + $0x30] sm:$0xff]  }
  0xa9   : > { %v1058_v52 = vld [vmem:[%s1981_s6] ss:$0 sm:$0xff] }
  0xaa   : > { %v1067_v62 = vld [vmem:[%s1983_s8] ss:$0 sm:$0xff] }
  0xab   : > { %1137 = vmatpush3.bf16.msra.mxu0 %v1306_v5  ;;  %1157 = vmatpush3.bf16.msra.mxu1 %v1315_v10 }
  0xac   : > { %1138 = vmatprep.subr.bf16.mxu0 %v1569_v0  ;;  %1158 = vmatprep.subr.bf16.mxu1 %v1569_v0 }
  0xaf   : > { %1139 = vmatpush3.bf16.msra.mxu0 %v1307_v7  ;;  %1159 = vmatpush3.bf16.msra.mxu1 %v1316_v12 }
  0xb0   : > { %1140 = vmatprep.subr.bf16.mxu0 %v1569_v0  ;;  %1160 = vmatprep.subr.bf16.mxu1 %v1569_v0 }
  0xb3   : > { %1141 = vmatpush3.bf16.msra.mxu0 %v1308_v9  ;;  %1161 = vmatpush3.bf16.msra.mxu1 %v1317_v14 }
  0xb4   : > { %1142 = vmatprep.subr.bf16.mxu0 %v1569_v0  ;;  %1162 = vmatprep.subr.bf16.mxu1 %v1569_v0 }
  0xb7   : > { %1143 = vmatpush3.bf16.msra.mxu0 %v1309_v11  ;;  %1163 = vmatpush3.bf16.msra.mxu1 %v1318_v16 }
  0xb8   : > { %1144 = vmatprep.subr.bf16.mxu0 %v1569_v0  ;;  %1164 = vmatprep.subr.bf16.mxu1 %v1569_v0 }
  0xbb   : > { %1145 = vmatpush3.bf16.msra.mxu0 %v1310_v13  ;;  %1165 = vmatpush3.bf16.msra.mxu1 %v1319_v17 }
  0xbc   : > { %1170 = vmatprep.subr.bf16.mxu0 %v1569_v0  ;;  %1190 = vmatprep.subr.bf16.mxu1 %v1569_v0 }
  0xbe   : > { %1147 = vmatmul.mubr.bf16.vlgmr.msra.gmra.mrb[0].mxu0 %v1311_v15 }
  0xbf   : > { %1186 = vmatprep.mubr.msk.bf16.mxu0 %vm1570_vm0, %v1569_v0  ;;  %1171 = vmatpush3.bf16.msra.mxu0 %v1320_v18 }
  0xc0   : > { %1172 = vmatprep.subr.bf16.mxu0 %v1569_v0 }
  0xc3   : > { %1173 = vmatpush3.bf16.msra.mxu0 %v1321_v19 }
  0xc4   : > { %1174 = vmatprep.subr.bf16.mxu0 %v1569_v0 }
  0xc7   : > { %1175 = vmatpush3.bf16.msra.mxu0 %v1322_v20 }
  0xc8   : > { %1176 = vmatprep.subr.bf16.mxu0 %v1569_v0 }
  0xcb   : > { %1177 = vmatpush3.bf16.msra.mxu0 %v1323_v21 }
  0xcc   : > { %1178 = vmatprep.subr.bf16.mxu0 %v1569_v0 }
  0xcf   : > { %1179 = vmatpush3.bf16.msra.mxu0 %v1324_v22 }
  0xd0   : > { %1180 = vmatprep.subr.bf16.mxu0 %v1569_v0 }
  0xd3   : > { %1181 = vmatpush3.bf16.msra.mxu0 %v1325_v23 }
  0xd4   : > { %1182 = vmatprep.subr.bf16.mxu0 %v1569_v0 }
  0xd7   : > { %1183 = vmatpush3.bf16.msra.mxu0 %v1326_v34 }
  0xd8   : > { %1184 = vmatprep.subr.bf16.mxu0 %v1569_v0 }
  0xdb   : > { %1185 = vmatpush3.bf16.msra.mxu0 %v1327_v35 }
 0x191   : > { %v525_v25 = vpop.f32.mrb[0].mxu0 }
 0x192   : > { %v526_v26 = vadd.f32 %v1039_v24, %v525_v25  ;;  %v1148_v27 = vpop.f32.mrb[1].mxu0 }
 0x193   : > { %v528_v28 = vpop.f32.mrb[2].mxu0 }
 0x194   : > { %v529_v29 = vadd.f32 %v1039_v24, %v528_v28  ;;  %v1149_v30 = vpop.f32.mrb[3].mxu0  ;;  %v532_v31 = vmax.f32 %v526_v26, 0.0 }
 0x196   : > { %v533_v32 = vmax.f32 %v529_v29, 0.0 }
 0x198   : > { %v551_v33 = vpack.c.bf16 %v533_v32, %v532_v31 }
 0x19a   : > { %1167 = vmatmul.mubr.bf16.vlgmr.msra.gmra.mrb[0].mxu1 %v551_v33 }
 0x19b   : > { %1206 = vmatprep.mubr.msk.bf16.mxu1 %vm1570_vm0, %v1569_v0  ;;  %1191 = vmatpush3.bf16.msra.mxu1 %v1328_v36 }
 0x19c   : > { %1192 = vmatprep.subr.bf16.mxu1 %v1569_v0 }
 0x19f   : > { %1193 = vmatpush3.bf16.msra.mxu1 %v1329_v37 }
 0x1a0   : > { %1194 = vmatprep.subr.bf16.mxu1 %v1569_v0 }
 0x1a3   : > { %1195 = vmatpush3.bf16.msra.mxu1 %v1330_v38 }
 0x1a4   : > { %1196 = vmatprep.subr.bf16.mxu1 %v1569_v0 }
 0x1a7   : > { %1197 = vmatpush3.bf16.msra.mxu1 %v1331_v39 }
 0x1a8   : > { %1198 = vmatprep.subr.bf16.mxu1 %v1569_v0 }
 0x1ab   : > { %1199 = vmatpush3.bf16.msra.mxu1 %v1332_v40 }
 0x1ac   : > { %1200 = vmatprep.subr.bf16.mxu1 %v1569_v0 }
 0x1af   : > { %1201 = vmatpush3.bf16.msra.mxu1 %v1333_v41 }
 0x1b0   : > { %1202 = vmatprep.subr.bf16.mxu1 %v1569_v0 }
 0x1b3   : > { %1203 = vmatpush3.bf16.msra.mxu1 %v1334_v50 }
 0x1b4   : > { %1204 = vmatprep.subr.bf16.mxu1 %v1569_v0 }
 0x1b7   : > { %1205 = vmatpush3.bf16.msra.mxu1 %v1335_v51 }
 0x26d   : > { %v640_v43 = vpop.f32.mrb[0].mxu1 }
 0x26e   : > { %v1168_v44 = vpop.f32.mrb[1].mxu1  ;;  %v641_v46 = vadd.f32 %v1049_v42, %v640_v43 }
 0x26f   : > { %v643_v45 = vpop.f32.mrb[2].mxu1 }
 0x270   : > { %v644_v47 = vadd.f32 %v1049_v42, %v643_v45  ;;  %v1169_v48 = vpop.f32.mrb[3].mxu1 }
 0x272   : > { %v664_v49 = vpack.c.bf16 %v644_v47, %v641_v46 }
 0x274   : > { %1187 = vmatmul.mubr.bf16.vlgmr.msra.gmra.mrb[4].mxu0 %v664_v49 }
 0x347   : > { %v753_v53 = vpop.f32.mrb[4].mxu0 }
 0x348   : > { %v754_v54 = vadd.f32 %v1058_v52, %v753_v53  ;;  %v1188_v55 = vpop.f32.mrb[5].mxu0 }
 0x349   : > { %v756_v56 = vpop.f32.mrb[6].mxu0 }
 0x34a   : > { %v757_v57 = vadd.f32 %v1058_v52, %v756_v56  ;;  %v1189_v58 = vpop.f32.mrb[7].mxu0  ;;  %v760_v59 = vmax.f32 %v754_v54, 0.0 }
 0x34c   : > { %v761_v60 = vmax.f32 %v757_v57, 0.0 }
 0x34e   : > { %v779_v61 = vpack.c.bf16 %v761_v60, %v760_v59 }
 0x350   : > { %1207 = vmatmul.mubr.bf16.vlgmr.msra.gmra.mrb[4].mxu1 %v779_v61 }
 0x423   : > { %v868_v63 = vpop.f32.mrb[4].mxu1 }
 0x424   : > { %v869_v0 = vadd.f32 %v1067_v62, %v868_v63  ;;  %v1208_v1 = vpop.f32.mrb[5].mxu1 }
 0x425   : > { %v871_v2 = vpop.f32.mrb[6].mxu1 }
 0x426   : > { %v1076_v3 = vmul.f32 -1.442695, %v869_v0  ;;  %v872_v4 = vadd.f32 %v1067_v62, %v871_v2  ;;  %v1209_v5 = vpop.f32.mrb[7].mxu1 }
 0x428   : > { %1336 = vpow2.f32 %v1076_v3  ;;  %v1077_v6 = vmul.f32 -1.442695, %v872_v4 }
 0x42a   : > { %1338 = vpow2.f32 %v1077_v6 }
 0x432   : > { %v1337_v7 = vpop.eup %1336 }
 0x433   : > { %v881_v8 = vadd.f32 1.0, %v1337_v7 }
 0x434   : > { %v1339_v9 = vpop.eup %1338 }
 0x435   : > { %v882_v10 = vadd.f32 1.0, %v1339_v9  ;;  %1340 = vrcp.f32 %v881_v8 }
 0x437   : > { %1342 = vrcp.f32 %v882_v10 }
 0x43f   : > { %v1341_v11 = vpop.eup %1340 }
 0x441   : > { %v1343_v12 = vpop.eup %1342 }
 0x442   : > { %v1092_v13 = vpack.c.bf16 %v1343_v12, %v1341_v11 }
 0x444   : > { %1093 = vst [vmem:[%s408_s16] sm:$0xff] %v1092_v13  }
 0x445   : > { %1499 = shalt.err (!%p1496_p13)
}
 0x446   : > { %s1500_s22 = scalar_lea.hbm %s1929_s17, 128  ;;  %s1504_s18 = scalar_lea.hbm %s2008_s15, 256 }
 0x447   : > { %p1501_p9 = scmp.ne.s32.totalorder %s1929_s17, %s1500_s22  ;;  %p1505_p4 = scmp.lt.u32.totalorder %s1929_s17, %s2008_s15 }
 0x448   : > { %p1506_p8 = scmp.lt.u32.totalorder %s1504_s18, %s1500_s22  ;;  %p1508_p3 = scmp.lt.u32.totalorder %s1500_s22, %s1929_s17 }
 0x449   : > { %p1502_p0 = pnand %p1501_p9, %p1795_p10 }
 0x44a   : > { %p1507_p6 = por %p1506_p8, %p1505_p4 }
 0x44b   : > { %p1503_p11 = pneg %p1502_p0 }
 0x44c   : > { %p1509_p5 = por %p1508_p3, %p1507_p6 }
 0x44e   : > { %p1510_p7 = pnand %p1509_p5, %p1503_p11 }
 0x450   : > { %1513 = shalt.err (!%p1510_p7)
}
 0x451   : > { %s1572_s9 = smov 64   ;;  %s1573_s26 = smov 4  }
 0x452   : > { %1228 = dma.vmem_to_hbm [thread:$0]  (%p1795_p10), %s1931_s23, 128, %s1929_s17, %s898_s25, %s1572_s9, %s1572_s9, %s1573_s26  }
 0x453 PF: > { %s2009_s13 = sld [smem:[#allocation16_spill]]  ;;  %s2010_s21 = sld [smem:[#allocation17_spill]] }
 0x454   : > { %p2012_p1 = scmp.ge.s32.totalorder %s1560_s12, 2 }
 0x459   : > { %s926_s19 = sand.u32 1, %s2009_s13   ;;  %p2011_p12 = scmp.ne.s32.totalorder %s2010_s21, 0 }
 0x45a   : > { %s927_s22 = scalar_lea.sflag [#allocation4], %s926_s19 }
 0x45b   : > { %p1248_p2 = pnand %p2012_p1, %p2011_p12 }
 0x45d   : > { %1543 = dma.done.wait (!%p1248_p2), %s927_s22, 128  }
 0x45e   : > { %1545 = vsyncadd (!%p1248_p2), %s927_s22, 4294967168  ;;  %p24_p13 = scmp.ge.s32.totalorder %s1785_s14, 4   ;;  %s2013_s30 = smov %s1552_s10 }
 0x45f   : > { %s2014_s10 = smov %s1556_s11  ;;  %s2015_s11 = smov %s1801_s28 }
 0x460   : > { %s2016_s12 = smov %s1785_s14  ;;  %26 = sbr.rel (!%p24_p13) target bundleno = 9 (0x9), region = 117 }
 0x467   :  { %932 = vsyncpa [#allocation3], 1 }
 0x468   :  { %934 = vsyncpa [#allocation3 + $0x1], 1 }
 0x469   :  { %935 = vsyncpa [#allocation6], 1 }
 0x46a   :  { %936 = vsyncpa [#allocation9], 1 }
 0x46b   :  { %937 = vsyncpa [#allocation4], 1 }
 0x46c   :  { %939 = vsyncpa [#allocation4 + $0x1], 1 }

// kernel: tpu_custom_call.1
= control target key start
LH: loop header
LB: loop body
LE: loop exit
PB: predicated region body
PF: predicated region fallthrough
CT: control target
= control target key end

     0   :  { %s1975_s0 = inlined_call_operand.hbm [shape: bf16[32,128], index: 0, kind: input, shape index: {}]   ;;  %s1976_s1 = inlined_call_operand.hbm [shape: bf16[128,128], index: 1, kind: input, shape index: {}]   ;;  %s1977_s2 = inlined_call_operand.vmem [shape: f32[1,128], index: 2, kind: input, shape index: {}]   ;;  %s1978_s3 = inlined_call_operand.hbm [shape: bf16[128,128], index: 3, kind: input, shape index: {}]   ;;  %s1979_s4 = inlined_call_operand.vmem [shape: f32[1,128], index: 4, kind: input, shape index: {}]   ;;  %s1980_s5 = inlined_call_operand.hbm [shape: bf16[128,128], index: 5, kind: input, shape index: {}]   ;;  %s1981_s6 = inlined_call_operand.vmem [shape: f32[1,128], index: 6, kind: input, shape index: {}]   ;;  %s1982_s7 = inlined_call_operand.hbm [shape: bf16[128,128], index: 7, kind: input, shape index: {}]   ;;  %s1983_s8 = inlined_call_operand.vmem [shape: f32[1,128], index: 8, kind: input, shape index: {}]   ;;  %s1984_s9 = inlined_call_operand.hbm [shape: bf16[32,128], index: 9, kind: output, shape index: {}]  }
   0x1   :  { %1991 = sst [smem:[#allocation18_spill]] %s1984_s9 }
   0x2   :  { %14 = vsyncpa [#allocation3], 0 }
   0x3   :  { %16 = vsyncpa [#allocation3 + $0x1], 0 }
   0x4   :  { %17 = vsyncpa [#allocation6], 0 }
   0x5   :  { %18 = vsyncpa [#allocation9], 0 }
   0x6   :  { %19 = vsyncpa [#allocation4], 0 }
   0x7   :  { %21 = vsyncpa [#allocation4 + $0x1], 0  ;;  %s1624_s30 = smov 0   ;;  %s1626_s10 = smov 0  }
   0x8   :  { %s1628_s11 = smov 0   ;;  %s1630_s12 = smov 0  }
   0x9 LB: > { %1992 = sst [smem:[#allocation16_spill]] %s1548_s30  ;;  %s1645_s13 = sadd.s32 4294967295, %s1560_s12   ;;  %s1560_s12 = sphi %s1630_s12, %s2016_s12   ;;  %s1556_s11 = sphi %s1628_s11, %s2015_s11   ;;  %s1552_s10 = sphi %s1626_s10, %s2014_s10   ;;  %s1548_s30 = sphi %s1624_s30, %s2013_s30  }
   0xa   : > { %s1022_s14 = sadd.s32 4294967294, %s1560_s12   ;;  %p47_p0 = scmp.ne.s32.totalorder %s1552_s10, %s1548_s30 }
   0xb   : > { %p1985_p1 = scmp.eq.s32.totalorder %s1645_s13, 0  ;;  %p245_p3 = scmp.eq.s32.totalorder %s1022_s14, 1 }
   0xc   : > { %p1023_p5 = scmp.ge.s32.totalorder %s1560_s12, 1  ;;  %p252_p7 = scmp.lt.s32.totalorder %s1560_s12, 3 }
   0xd   : > { %p1654_p4 = por %p1985_p1, %p47_p0  ;;  %p1659_p6 = por %p245_p3, %p47_p0 }
   0xe   : > { %p1664_p8 = pnand %p1023_p5, %p252_p7  ;;  %s1562_s18 = smov [#allocation5]  }
   0xf   : > { %s1993_s15 = scalar_select %p1654_p4, 1, 0 }
  0x10   : > { %s1994_s16 = scalar_select %p1659_p6, 1, 0 }
  0x11   : > { %s1996_s17 = scalar_select %p1664_p8, 1, 0 }
  0x12   : > { %1995 = sst [smem:[#allocation17_spill]] %s1994_s16  ;;  %s264_s19 = sshll.u32 %s1562_s18, 4  ;;  %s1668_s19 = int_to_ptr.vmem [resolvable:$true] %s264_s19 }
  0x13   : > { %p1230_p9 = pneg %p1664_p8  ;;  %s1563_s21 = smov [#allocation8]  }
  0x14   : > { %s296_s22 = sshll.u32 %s1563_s21, 4  ;;  %s1564_s23 = smov [#allocation7]   ;;  %s1679_s22 = int_to_ptr.vmem [resolvable:$true] %s296_s22 }
  0x15   : > { %p1675_p11 = pnand %p1230_p9, %p1985_p1  ;;  %s1681_s24 = sshll.u32 %s1564_s23, 4  ;;  %s281_s24 = int_to_ptr.vmem [resolvable:$true] %s1681_s24 }
  0x16   : > { %s1344_s27 = scalar_lea.hbm %s1976_s1, 1024 }
  0x17   : > { %p1345_p12 = scmp.ne.s32.totalorder %s1976_s1, %s1344_s27  ;;  %p1691_p13 = pneg %p1675_p11 }
  0x18   : > { %p1351_p5 = scmp.lt.u32.totalorder %s1344_s27, %s1976_s1 }
  0x19   : > { %p1347_p0 = pnand %p1691_p13, %p1345_p12 }
  0x1b   : > { %p1348_p3 = pneg %p1347_p0 }
  0x1d   : > { %p1353_p7 = pnand %p1351_p5, %p1348_p3 }
  0x1f   : > { %1356 = shalt.err (!%p1353_p7)
}
  0x20   : > { %s1357_s23 = scalar_lea.vmem %s1668_s19, 1024  ;;  %p1365_p2 = scmp.lt.s32.totalorder %s1668_s19, %s1668_s19 }
  0x21   : > { %p1358_p9 = scmp.ne.s32.totalorder %s1668_s19, %s1357_s23  ;;  %p1366_p6 = scmp.lt.s32.totalorder %s1357_s23, %s1357_s23 }
  0x23   : > { %p1360_p10 = pnand %p1358_p9, %p1691_p13  ;;  %p1367_p12 = por %p1366_p6, %p1365_p2 }
  0x25   : > { %p1361_p1 = pneg %p1360_p10 }
  0x27   : > { %p1368_p0 = pnand %p1367_p12, %p1361_p1 }
  0x29   : > { %1371 = shalt.err (!%p1368_p0)
}
  0x2a   : > { %s1565_s25 = smov 64   ;;  %s1566_s26 = smov 4  }
  0x2b   : > { %1233 = dma.hbm_to_vmem [thread:$0]  (!%p1675_p11), %s1976_s1, 1024, %s1668_s19, [#allocation6], %s1565_s25, %s1565_s25, %s1566_s26  }
  0x2c   : > { %s1372_s21 = scalar_lea.hbm %s1980_s5, 1024 }
  0x2d   : > { %p1373_p1 = scmp.ne.s32.totalorder %s1980_s5, %s1372_s21  ;;  %p1379_p10 = scmp.lt.u32.totalorder %s1372_s21, %s1980_s5 }
  0x2f   : > { %p1375_p2 = pnand %p1373_p1, %p1691_p13 }
  0x31   : > { %p1376_p6 = pneg %p1375_p2 }
  0x33   : > { %p1381_p3 = pnand %p1379_p10, %p1376_p6 }
  0x35   : > { %1384 = shalt.err (!%p1381_p3)
}
  0x36   : > { %s1385_s19 = scalar_lea.vmem %s1679_s22, 1024  ;;  %p1393_p12 = scmp.lt.s32.totalorder %s1679_s22, %s1679_s22 }
  0x37   : > { %p1386_p5 = scmp.ne.s32.totalorder %s1679_s22, %s1385_s19  ;;  %p1394_p0 = scmp.lt.s32.totalorder %s1385_s19, %s1385_s19 }
  0x39   : > { %p1388_p7 = pnand %p1386_p5, %p1691_p13  ;;  %p1395_p1 = por %p1394_p0, %p1393_p12 }
  0x3b   : > { %p1389_p9 = pneg %p1388_p7 }
  0x3d   : > { %p1396_p2 = pnand %p1395_p1, %p1389_p9 }
  0x3f   : > { %1399 = shalt.err (!%p1396_p2)
}
  0x40   : > { %1239 = dma.hbm_to_vmem [thread:$0]  (!%p1675_p11), %s1980_s5, 1024, %s1679_s22, [#allocation9], %s1565_s25, %s1565_s25, %s1566_s26  }
  0x41   : > { %s1400_s28 = scalar_lea.hbm %s1978_s3, 1024 }
  0x42   : > { %p1401_p6 = scmp.ne.s32.totalorder %s1978_s3, %s1400_s28  ;;  %p1407_p5 = scmp.lt.u32.totalorder %s1400_s28, %s1978_s3 }
  0x44   : > { %p1403_p10 = pnand %p1401_p6, %p1691_p13 }
  0x46   : > { %p1404_p3 = pneg %p1403_p10 }
  0x48   : > { %p1409_p7 = pnand %p1407_p5, %p1404_p3 }
  0x4a   : > { %1412 = shalt.err (!%p1409_p7)
}
  0x4b   : > { %s1413_s19 = scalar_lea.vmem %s281_s24, 1024  ;;  %p1421_p1 = scmp.lt.s32.totalorder %s281_s24, %s281_s24 }
  0x4c   : > { %p1414_p9 = scmp.ne.s32.totalorder %s281_s24, %s1413_s19  ;;  %p1422_p2 = scmp.lt.s32.totalorder %s1413_s19, %s1413_s19 }
  0x4e   : > { %p1416_p12 = pnand %p1414_p9, %p1691_p13  ;;  %p1423_p4 = por %p1422_p2, %p1421_p1 }
  0x50   : > { %p1417_p0 = pneg %p1416_p12 }
  0x52   : > { %p1424_p8 = pnand %p1423_p4, %p1417_p0 }
  0x54   : > { %1427 = shalt.err (!%p1424_p8)
}
  0x55   : > { %1236 = dma.hbm_to_vmem [thread:$0]  (!%p1675_p11), %s1978_s3, 1024, %s281_s24, [#allocation6], %s1565_s25, %s1565_s25, %s1566_s26  }
  0x56   : > { %s1567_s30 = smov [#allocation10]   ;;  %s1428_s29 = scalar_lea.hbm %s1982_s7, 1024 }
  0x57   : > { %s312_s16 = sshll.u32 %s1567_s30, 4  ;;  %p1429_p4 = scmp.ne.s32.totalorder %s1982_s7, %s1428_s29  ;;  %s313_s16 = int_to_ptr.vmem [resolvable:$true] %s312_s16 }
  0x58   : > { %p1435_p10 = scmp.lt.u32.totalorder %s1428_s29, %s1982_s7 }
  0x59   : > { %p1431_p8 = pnand %p1429_p4, %p1691_p13 }
  0x5b   : > { %p1432_p6 = pneg %p1431_p8 }
  0x5d   : > { %p1437_p3 = pnand %p1435_p10, %p1432_p6 }
  0x5f   : > { %1440 = shalt.err (!%p1437_p3)
}
  0x60   : > { %s1441_s24 = scalar_lea.vmem %s313_s16, 1024  ;;  %p1449_p12 = scmp.lt.s32.totalorder %s313_s16, %s313_s16 }
  0x61   : > { %p1442_p5 = scmp.ne.s32.totalorder %s313_s16, %s1441_s24  ;;  %p1450_p0 = scmp.lt.s32.totalorder %s1441_s24, %s1441_s24 }
  0x63   : > { %p1444_p7 = pnand %p1442_p5, %p1691_p13  ;;  %p1451_p1 = por %p1450_p0, %p1449_p12 }
  0x65   : > { %p1445_p9 = pneg %p1444_p7 }
  0x67   : > { %p1452_p2 = pnand %p1451_p1, %p1445_p9 }
  0x69   : > { %1455 = shalt.err (!%p1452_p2)
}
  0x6a   : > { %1242 = dma.hbm_to_vmem [thread:$0]  (!%p1675_p11), %s1982_s7, 1024, %s313_s16, [#allocation9], %s1565_s25, %s1565_s25, %s1566_s26  }
  0x6b   : > { %s1785_s14 = sadd.s32 1, %s1560_s12   ;;  %s34_s20 = sadd.s32 1, %s1556_s11 }
  0x6c   : > { %s31_s30 = ssub.s32 %s1560_s12, %s1785_s14  ;;  %p41_p13 = scmp.ne.s32.totalorder %s1556_s11, %s1552_s10 }
  0x6d   : > { %p32_p4 = scmp.eq.s32.totalorder %s31_s30, 0  ;;  %p42_p8 = scmp.eq.s32.totalorder %s1560_s12, 0 }
  0x6e   : > { %p1999_p6 = scmp.eq.s32.totalorder %s1645_s13, 1  ;;  %p1255_p3 = scmp.lt.s32.totalorder %s1560_s12, 2 }
  0x6f   : > { %s1801_s28 = scalar_select %p32_p4, %s1556_s11, %s34_s20  }
  0x70   : > { %p1795_p10 = por %p1999_p6, %p41_p13  ;;  %p43_p5 = por %p42_p8, %p41_p13 }
  0x71   : > { %s329_s29 = sand.u32 1, %s1556_s11   ;;  %s1085_s16 = sshll.u32 %s1560_s12, 7 }
  0x72   : > { %s1029_s18 = sshll.u32 %s329_s29, 3  ;;  %s1808_s19 = scalar_lea.hbm %s1975_s0, %s1085_s16 }
  0x73   : > { %s333_s24 = scalar_lea.vmem [#allocation2], %s1029_s18  ;;  %p1812_p11 = pnand %p1255_p3, %p43_p5 }
  0x74   : > { %s340_s22 = sshll.u32 %s333_s24, 4  ;;  %s1816_s20 = scalar_lea.sflag [#allocation3], %s329_s29  ;;  %s1810_s22 = int_to_ptr.vmem [resolvable:$true] %s340_s22 }
  0x75   : > { %s1456_s30 = scalar_lea.hbm %s1808_s19, 128  ;;  %p1458_p9 = pneg %p1812_p11 }
  0x76   : > { %p1457_p7 = scmp.ne.s32.totalorder %s1808_s19, %s1456_s30  ;;  %s1461_s21 = scalar_lea.hbm %s1975_s0, 256 }
  0x77   : > { %p1462_p1 = scmp.lt.u32.totalorder %s1808_s19, %s1975_s0  ;;  %p1463_p2 = scmp.lt.u32.totalorder %s1461_s21, %s1456_s30 }
  0x78   : > { %p1459_p12 = pnand %p1458_p9, %p1457_p7  ;;  %p1465_p4 = scmp.lt.u32.totalorder %s1456_s30, %s1808_s19 }
  0x79   : > { %p1464_p13 = por %p1463_p2, %p1462_p1 }
  0x7a   : > { %p1460_p0 = pneg %p1459_p12 }
  0x7b   : > { %p1466_p8 = por %p1465_p4, %p1464_p13 }
  0x7d   : > { %p1467_p6 = pnand %p1466_p8, %p1460_p0 }
  0x7f   : > { %1470 = shalt.err (!%p1467_p6)
}
  0x80   : > { %s1471_s29 = scalar_lea.vmem %s1810_s22, 128  ;;  %s1568_s18 = smov [#allocation2]  }
  0x81   : > { %p1472_p3 = scmp.ne.s32.totalorder %s1810_s22, %s1471_s29  ;;  %s1476_s16 = sshll.u32 %s1568_s18, 4  ;;  %s1477_s16 = int_to_ptr.vmem [resolvable:$false] %s1476_s16 }
  0x82   : > { %s1478_s23 = scalar_lea.vmem %s1477_s16, 256  ;;  %p1479_p12 = scmp.lt.s32.totalorder %s1810_s22, %s1477_s16 }
  0x83   : > { %p1474_p5 = pnand %p1472_p3, %p1458_p9  ;;  %p1480_p1 = scmp.lt.s32.totalorder %s1478_s23, %s1471_s29 }
  0x85   : > { %p1475_p7 = pneg %p1474_p5  ;;  %p1481_p2 = por %p1480_p1, %p1479_p12 }
  0x87   : > { %p1482_p13 = pnand %p1481_p2, %p1475_p7 }
  0x89   : > { %1485 = shalt.err (!%p1482_p13)
}
  0x8a   : > { %1246 = dma.hbm_to_vmem [thread:$0]  (!%p1812_p11), %s1808_s19, 128, %s1810_s22, %s1816_s20, %s1565_s25, %s1565_s25, %s1566_s26  }
  0x8b   : > { %p2002_p9 = scmp.ne.s32.totalorder %s1996_s17, 0 }
  0x8c   : > { %s1850_s30 = sand.u32 (!%p2002_p9), 1, %s1552_s10   ;;  %p2003_p0 = scmp.ne.s32.totalorder (!%p2002_p9), %s1993_s15, 0 }
  0x8d   : > { %352 = sbr.rel (%p2002_p9) target bundleno = 1107 (0x453), region = 56  ;;  %s1033_s21 = sshll.u32 (!%p2002_p9), %s1850_s30, 3 }
  0x8e   : > { %s355_s24 = scalar_lea.sflag (!%p2002_p9), [#allocation3], %s1850_s30  ;;  %s1856_s9 = scalar_lea.vmem (!%p2002_p9), [#allocation2], %s1033_s21 }
  0x94   : > { %1531 = dma.done.wait (%p2003_p0), %s355_s24, 128  }
  0x95   : > { %1533 = vsyncadd (%p2003_p0), %s355_s24, 4294967168  ;;  %p2004_p11 = scmp.eq.s32.totalorder %s1645_s13, 0 }
  0x97   : > { %1535 = dma.done.wait (%p2004_p11), [#allocation6], 2048   ;;  %p2005_p4 = pmov %p2004_p11 }
  0x99   : > { %1537 = vsyncadd (%p2005_p4), [#allocation6], 4294965248  ;;  %p2006_p8 = pmov %p2005_p4 }
  0x9a   : > { %p2007_p6 = pmov %p2005_p4 }
  0x9b   : > { %1539 = dma.done.wait (%p2006_p8), [#allocation9], 2048  }
  0x9c   : > { %1541 = vsyncadd (%p2007_p6), [#allocation9], 4294965248  ;;  %v1569_v0 = vmov 0.0   ;;  %vm1570_vm0 = vmmov 0   ;;  %v1303_v1 = vld [vmem:[#allocation5] sm:$0xff]   ;;  %v1304_v2 = vld [vmem:[#allocation5 + $0x8] sm:$0xff]  }
  0x9d   : > { %1130 = vmatprep.subr.bf16.mxu0 %v1569_v0  ;;  %1146 = vmatprep.mubr.msk.bf16.mxu0 %vm1570_vm0, %v1569_v0  ;;  %v1305_v3 = vld [vmem:[#allocation5 + $0x10] sm:$0xff]   ;;  %v1312_v4 = vld [vmem:[#allocation7] sm:$0xff]   ;;  %v1306_v5 = vld [vmem:[#allocation5 + $0x18] sm:$0xff]   ;;  %s1088_s18 = sshll.u32 %s1645_s13, 7  ;;  %s408_s16 = scalar_lea.vmem [#allocation11], %s1033_s21 }
  0x9e   : > { %1150 = vmatprep.subr.bf16.mxu1 %v1569_v0  ;;  %1166 = vmatprep.mubr.msk.bf16.mxu1 %vm1570_vm0, %v1569_v0  ;;  %v1313_v6 = vld [vmem:[#allocation7 + $0x8] sm:$0xff]   ;;  %v1307_v7 = vld [vmem:[#allocation5 + $0x20] sm:$0xff]   ;;  %v1314_v8 = vld [vmem:[#allocation7 + $0x10] sm:$0xff]   ;;  %s911_s23 = sshll.u32 %s408_s16, 4  ;;  %s2008_s15 = sld [smem:[#allocation18_spill]]  ;;  %s1931_s23 = int_to_ptr.vmem [resolvable:$true] %s911_s23 }
  0x9f   : > { %1131 = vmatpush3.bf16.msra.mxu0 %v1303_v1  ;;  %1151 = vmatpush3.bf16.msra.mxu1 %v1312_v4  ;;  %v1308_v9 = vld [vmem:[#allocation5 + $0x28] sm:$0xff]   ;;  %v1315_v10 = vld [vmem:[#allocation7 + $0x18] sm:$0xff]   ;;  %v1309_v11 = vld [vmem:[#allocation5 + $0x30] sm:$0xff]   ;;  %s898_s25 = scalar_lea.sflag [#allocation4], %s1850_s30  ;;  %s1486_s26 = scalar_lea.vmem %s1931_s23, 128 }
  0xa0   : > { %1132 = vmatprep.subr.bf16.mxu0 %v1569_v0  ;;  %1152 = vmatprep.subr.bf16.mxu1 %v1569_v0  ;;  %v1316_v12 = vld [vmem:[#allocation7 + $0x20] sm:$0xff]   ;;  %v1310_v13 = vld [vmem:[#allocation5 + $0x38] sm:$0xff]   ;;  %v1317_v14 = vld [vmem:[#allocation7 + $0x28] sm:$0xff]   ;;  %p1487_p3 = scmp.ne.s32.totalorder %s1931_s23, %s1486_s26  ;;  %s1571_s13 = smov [#allocation11]  }
  0xa1   : > { %v1311_v15 = vld [vmem:[%s1856_s9] sm:$0xff]   ;;  %v1320_v18 = vld [vmem:[#allocation8] sm:$0xff]   ;;  %v1321_v19 = vld [vmem:[#allocation8 + $0x8] sm:$0xff]   ;;  %s1490_s21 = sshll.u32 %s1571_s13, 4  ;;  %s1491_s21 = int_to_ptr.vmem [resolvable:$false] %s1490_s21 }
  0xa2   : > { %v1318_v16 = vld [vmem:[#allocation7 + $0x30] sm:$0xff]   ;;  %v1319_v17 = vld [vmem:[#allocation7 + $0x38] sm:$0xff]   ;;  %v1324_v22 = vld [vmem:[#allocation8 + $0x20] sm:$0xff]   ;;  %p1488_p5 = pnand %p1487_p3, %p1795_p10  ;;  %s1492_s19 = scalar_lea.vmem %s1491_s21, 256 }
  0xa3   : > { %1133 = vmatpush3.bf16.msra.mxu0 %v1304_v2  ;;  %1153 = vmatpush3.bf16.msra.mxu1 %v1313_v6  ;;  %v1322_v20 = vld [vmem:[#allocation8 + $0x10] sm:$0xff]   ;;  %v1323_v21 = vld [vmem:[#allocation8 + $0x18] sm:$0xff]   ;;  %v1325_v23 = vld [vmem:[#allocation8 + $0x28] sm:$0xff]   ;;  %p1493_p12 = scmp.lt.s32.totalorder %s1931_s23, %s1491_s21  ;;  %p1494_p1 = scmp.lt.s32.totalorder %s1492_s19, %s1486_s26 }
  0xa4   : > { %1134 = vmatprep.subr.bf16.mxu0 %v1569_v0  ;;  %1154 = vmatprep.subr.bf16.mxu1 %v1569_v0  ;;  %v1039_v24 = vld [vmem:[%s1977_s2] ss:$0 sm:$0xff]  ;;  %v1327_v35 = vld [vmem:[#allocation8 + $0x38] sm:$0xff]   ;;  %v1328_v36 = vld [vmem:[#allocation10] sm:$0xff]   ;;  %s1929_s17 = scalar_lea.hbm %s2008_s15, %s1088_s18  ;;  %p1489_p7 = pneg %p1488_p5 }
  0xa5   : > { %v1326_v34 = vld [vmem:[#allocation8 + $0x30] sm:$0xff]   ;;  %v1329_v37 = vld [vmem:[#allocation10 + $0x8] sm:$0xff]   ;;  %v1331_v39 = vld [vmem:[#allocation10 + $0x18] sm:$0xff]   ;;  %p1495_p2 = por %p1494_p1, %p1493_p12 }
  0xa6   : > { %v1330_v38 = vld [vmem:[#allocation10 + $0x10] sm:$0xff]   ;;  %v1332_v40 = vld [vmem:[#allocation10 + $0x20] sm:$0xff]   ;;  %v1333_v41 = vld [vmem:[#allocation10 + $0x28] sm:$0xff]  }
  0xa7   : > { %1135 = vmatpush3.bf16.msra.mxu0 %v1305_v3  ;;  %1155 = vmatpush3.bf16.msra.mxu1 %v1314_v8  ;;  %v1049_v42 = vld [vmem:[%s1979_s4] ss:$0 sm:$0xff]  ;;  %v1335_v51 = vld [vmem:[#allocation10 + $0x38] sm:$0xff]   ;;  %p1496_p13 = pnand %p1495_p2, %p1489_p7 }
  0xa8   : > { %1136 = vmatprep.subr.bf16.mxu0 %v1569_v0  ;;  %1156 = vmatprep.subr.bf16.mxu1 %v1569_v0  ;;  %v1334_v50 = vld [vmem:[#allocation10 + $0x30] sm:$0xff]  }
  0xa9   : > { %v1058_v52 = vld [vmem:[%s1981_s6] ss:$0 sm:$0xff] }
  0xaa   : > { %v1067_v62 = vld [vmem:[%s1983_s8] ss:$0 sm:$0xff] }
  0xab   : > { %1137 = vmatpush3.bf16.msra.mxu0 %v1306_v5  ;;  %1157 = vmatpush3.bf16.msra.mxu1 %v1315_v10 }
  0xac   : > { %1138 = vmatprep.subr.bf16.mxu0 %v1569_v0  ;;  %1158 = vmatprep.subr.bf16.mxu1 %v1569_v0 }
  0xaf   : > { %1139 = vmatpush3.bf16.msra.mxu0 %v1307_v7  ;;  %1159 = vmatpush3.bf16.msra.mxu1 %v1316_v12 }
  0xb0   : > { %1140 = vmatprep.subr.bf16.mxu0 %v1569_v0  ;;  %1160 = vmatprep.subr.bf16.mxu1 %v1569_v0 }
  0xb3   : > { %1141 = vmatpush3.bf16.msra.mxu0 %v1308_v9  ;;  %1161 = vmatpush3.bf16.msra.mxu1 %v1317_v14 }
  0xb4   : > { %1142 = vmatprep.subr.bf16.mxu0 %v1569_v0  ;;  %1162 = vmatprep.subr.bf16.mxu1 %v1569_v0 }
  0xb7   : > { %1143 = vmatpush3.bf16.msra.mxu0 %v1309_v11  ;;  %1163 = vmatpush3.bf16.msra.mxu1 %v1318_v16 }
  0xb8   : > { %1144 = vmatprep.subr.bf16.mxu0 %v1569_v0  ;;  %1164 = vmatprep.subr.bf16.mxu1 %v1569_v0 }
  0xbb   : > { %1145 = vmatpush3.bf16.msra.mxu0 %v1310_v13  ;;  %1165 = vmatpush3.bf16.msra.mxu1 %v1319_v17 }
  0xbc   : > { %1170 = vmatprep.subr.bf16.mxu0 %v1569_v0  ;;  %1190 = vmatprep.subr.bf16.mxu1 %v1569_v0 }
  0xbe   : > { %1147 = vmatmul.mubr.bf16.vlgmr.msra.gmra.mrb[0].mxu0 %v1311_v15 }
  0xbf   : > { %1186 = vmatprep.mubr.msk.bf16.mxu0 %vm1570_vm0, %v1569_v0  ;;  %1171 = vmatpush3.bf16.msra.mxu0 %v1320_v18 }
  0xc0   : > { %1172 = vmatprep.subr.bf16.mxu0 %v1569_v0 }
  0xc3   : > { %1173 = vmatpush3.bf16.msra.mxu0 %v1321_v19 }
  0xc4   : > { %1174 = vmatprep.subr.bf16.mxu0 %v1569_v0 }
  0xc7   : > { %1175 = vmatpush3.bf16.msra.mxu0 %v1322_v20 }
  0xc8   : > { %1176 = vmatprep.subr.bf16.mxu0 %v1569_v0 }
  0xcb   : > { %1177 = vmatpush3.bf16.msra.mxu0 %v1323_v21 }
  0xcc   : > { %1178 = vmatprep.subr.bf16.mxu0 %v1569_v0 }
  0xcf   : > { %1179 = vmatpush3.bf16.msra.mxu0 %v1324_v22 }
  0xd0   : > { %1180 = vmatprep.subr.bf16.mxu0 %v1569_v0 }
  0xd3   : > { %1181 = vmatpush3.bf16.msra.mxu0 %v1325_v23 }
  0xd4   : > { %1182 = vmatprep.subr.bf16.mxu0 %v1569_v0 }
  0xd7   : > { %1183 = vmatpush3.bf16.msra.mxu0 %v1326_v34 }
  0xd8   : > { %1184 = vmatprep.subr.bf16.mxu0 %v1569_v0 }
  0xdb   : > { %1185 = vmatpush3.bf16.msra.mxu0 %v1327_v35 }
 0x191   : > { %v525_v25 = vpop.f32.mrb[0].mxu0 }
 0x192   : > { %v526_v26 = vadd.f32 %v1039_v24, %v525_v25  ;;  %v1148_v27 = vpop.f32.mrb[1].mxu0 }
 0x193   : > { %v528_v28 = vpop.f32.mrb[2].mxu0 }
 0x194   : > { %v529_v29 = vadd.f32 %v1039_v24, %v528_v28  ;;  %v1149_v30 = vpop.f32.mrb[3].mxu0  ;;  %v532_v31 = vmax.f32 %v526_v26, 0.0 }
 0x196   : > { %v533_v32 = vmax.f32 %v529_v29, 0.0 }
 0x198   : > { %v551_v33 = vpack.c.bf16 %v533_v32, %v532_v31 }
 0x19a   : > { %1167 = vmatmul.mubr.bf16.vlgmr.msra.gmra.mrb[0].mxu1 %v551_v33 }
 0x19b   : > { %1206 = vmatprep.mubr.msk.bf16.mxu1 %vm1570_vm0, %v1569_v0  ;;  %1191 = vmatpush3.bf16.msra.mxu1 %v1328_v36 }
 0x19c   : > { %1192 = vmatprep.subr.bf16.mxu1 %v1569_v0 }
 0x19f   : > { %1193 = vmatpush3.bf16.msra.mxu1 %v1329_v37 }
 0x1a0   : > { %1194 = vmatprep.subr.bf16.mxu1 %v1569_v0 }
 0x1a3   : > { %1195 = vmatpush3.bf16.msra.mxu1 %v1330_v38 }
 0x1a4   : > { %1196 = vmatprep.subr.bf16.mxu1 %v1569_v0 }
 0x1a7   : > { %1197 = vmatpush3.bf16.msra.mxu1 %v1331_v39 }
 0x1a8   : > { %1198 = vmatprep.subr.bf16.mxu1 %v1569_v0 }
 0x1ab   : > { %1199 = vmatpush3.bf16.msra.mxu1 %v1332_v40 }
 0x1ac   : > { %1200 = vmatprep.subr.bf16.mxu1 %v1569_v0 }
 0x1af   : > { %1201 = vmatpush3.bf16.msra.mxu1 %v1333_v41 }
 0x1b0   : > { %1202 = vmatprep.subr.bf16.mxu1 %v1569_v0 }
 0x1b3   : > { %1203 = vmatpush3.bf16.msra.mxu1 %v1334_v50 }
 0x1b4   : > { %1204 = vmatprep.subr.bf16.mxu1 %v1569_v0 }
 0x1b7   : > { %1205 = vmatpush3.bf16.msra.mxu1 %v1335_v51 }
 0x26d   : > { %v640_v43 = vpop.f32.mrb[0].mxu1 }
 0x26e   : > { %v1168_v44 = vpop.f32.mrb[1].mxu1  ;;  %v641_v46 = vadd.f32 %v1049_v42, %v640_v43 }
 0x26f   : > { %v643_v45 = vpop.f32.mrb[2].mxu1 }
 0x270   : > { %v644_v47 = vadd.f32 %v1049_v42, %v643_v45  ;;  %v1169_v48 = vpop.f32.mrb[3].mxu1 }
 0x272   : > { %v664_v49 = vpack.c.bf16 %v644_v47, %v641_v46 }
 0x274   : > { %1187 = vmatmul.mubr.bf16.vlgmr.msra.gmra.mrb[4].mxu0 %v664_v49 }
 0x347   : > { %v753_v53 = vpop.f32.mrb[4].mxu0 }
 0x348   : > { %v754_v54 = vadd.f32 %v1058_v52, %v753_v53  ;;  %v1188_v55 = vpop.f32.mrb[5].mxu0 }
 0x349   : > { %v756_v56 = vpop.f32.mrb[6].mxu0 }
 0x34a   : > { %v757_v57 = vadd.f32 %v1058_v52, %v756_v56  ;;  %v1189_v58 = vpop.f32.mrb[7].mxu0  ;;  %v760_v59 = vmax.f32 %v754_v54, 0.0 }
 0x34c   : > { %v761_v60 = vmax.f32 %v757_v57, 0.0 }
 0x34e   : > { %v779_v61 = vpack.c.bf16 %v761_v60, %v760_v59 }
 0x350   : > { %1207 = vmatmul.mubr.bf16.vlgmr.msra.gmra.mrb[4].mxu1 %v779_v61 }
 0x423   : > { %v868_v63 = vpop.f32.mrb[4].mxu1 }
 0x424   : > { %v869_v0 = vadd.f32 %v1067_v62, %v868_v63  ;;  %v1208_v1 = vpop.f32.mrb[5].mxu1 }
 0x425   : > { %v871_v2 = vpop.f32.mrb[6].mxu1 }
 0x426   : > { %v1076_v3 = vmul.f32 -1.442695, %v869_v0  ;;  %v872_v4 = vadd.f32 %v1067_v62, %v871_v2  ;;  %v1209_v5 = vpop.f32.mrb[7].mxu1 }
 0x428   : > { %1336 = vpow2.f32 %v1076_v3  ;;  %v1077_v6 = vmul.f32 -1.442695, %v872_v4 }
 0x42a   : > { %1338 = vpow2.f32 %v1077_v6 }
 0x432   : > { %v1337_v7 = vpop.eup %1336 }
 0x433   : > { %v881_v8 = vadd.f32 1.0, %v1337_v7 }
 0x434   : > { %v1339_v9 = vpop.eup %1338 }
 0x435   : > { %v882_v10 = vadd.f32 1.0, %v1339_v9  ;;  %1340 = vrcp.f32 %v881_v8 }
 0x437   : > { %1342 = vrcp.f32 %v882_v10 }
 0x43f   : > { %v1341_v11 = vpop.eup %1340 }
 0x441   : > { %v1343_v12 = vpop.eup %1342 }
 0x442   : > { %v1092_v13 = vpack.c.bf16 %v1343_v12, %v1341_v11 }
 0x444   : > { %1093 = vst [vmem:[%s408_s16] sm:$0xff] %v1092_v13  }
 0x445   : > { %1499 = shalt.err (!%p1496_p13)
}
 0x446   : > { %s1500_s22 = scalar_lea.hbm %s1929_s17, 128  ;;  %s1504_s18 = scalar_lea.hbm %s2008_s15, 256 }
 0x447   : > { %p1501_p9 = scmp.ne.s32.totalorder %s1929_s17, %s1500_s22  ;;  %p1505_p4 = scmp.lt.u32.totalorder %s1929_s17, %s2008_s15 }
 0x448   : > { %p1506_p8 = scmp.lt.u32.totalorder %s1504_s18, %s1500_s22  ;;  %p1508_p3 = scmp.lt.u32.totalorder %s1500_s22, %s1929_s17 }
 0x449   : > { %p1502_p0 = pnand %p1501_p9, %p1795_p10 }
 0x44a   : > { %p1507_p6 = por %p1506_p8, %p1505_p4 }
 0x44b   : > { %p1503_p11 = pneg %p1502_p0 }
 0x44c   : > { %p1509_p5 = por %p1508_p3, %p1507_p6 }
 0x44e   : > { %p1510_p7 = pnand %p1509_p5, %p1503_p11 }
 0x450   : > { %1513 = shalt.err (!%p1510_p7)
}
 0x451   : > { %s1572_s9 = smov 64   ;;  %s1573_s26 = smov 4  }
 0x452   : > { %1228 = dma.vmem_to_hbm [thread:$0]  (%p1795_p10), %s1931_s23, 128, %s1929_s17, %s898_s25, %s1572_s9, %s1572_s9, %s1573_s26  }
 0x453 PF: > { %s2009_s13 = sld [smem:[#allocation16_spill]]  ;;  %s2010_s21 = sld [smem:[#allocation17_spill]] }
 0x454   : > { %p2012_p1 = scmp.ge.s32.totalorder %s1560_s12, 2 }
 0x459   : > { %s926_s19 = sand.u32 1, %s2009_s13   ;;  %p2011_p12 = scmp.ne.s32.totalorder %s2010_s21, 0 }
 0x45a   : > { %s927_s22 = scalar_lea.sflag [#allocation4], %s926_s19 }
 0x45b   : > { %p1248_p2 = pnand %p2012_p1, %p2011_p12 }
 0x45d   : > { %1543 = dma.done.wait (!%p1248_p2), %s927_s22, 128  }
 0x45e   : > { %1545 = vsyncadd (!%p1248_p2), %s927_s22, 4294967168  ;;  %p24_p13 = scmp.ge.s32.totalorder %s1785_s14, 4   ;;  %s2013_s30 = smov %s1552_s10 }
 0x45f   : > { %s2014_s10 = smov %s1556_s11  ;;  %s2015_s11 = smov %s1801_s28 }
 0x460   : > { %s2016_s12 = smov %s1785_s14  ;;  %26 = sbr.rel (!%p24_p13) target bundleno = 9 (0x9), region = 117 }
 0x467   :  { %932 = vsyncpa [#allocation3], 1 }
 0x468   :  { %934 = vsyncpa [#allocation3 + $0x1], 1 }
 0x469   :  { %935 = vsyncpa [#allocation6], 1 }
 0x46a   :  { %936 = vsyncpa [#allocation9], 1 }
 0x46b   :  { %937 = vsyncpa [#allocation4], 1 }
 0x46c   :  { %939 = vsyncpa [#allocation4 + $0x1], 1 }

</bundles_post_ra>
